<compile_context>
chip_gen: v5e
topology: v5e:2x2
jax: 0.10.0
libtpu: 0.0.40
codegen_flags: <defaults>
</compile_context>

<pallas_src>
import math

import jax
import jax.numpy as jnp
from jax.experimental import pallas as pl
from jax.experimental.pallas import tpu as pltpu

BN_EPS = 1e-5
LANE = 128
SUBLANE = 8


def _round_up(x, m):
    return (x + m - 1) // m * m


def _vmem_budget_bytes():
    """Generation-dependent (planning budget, Mosaic vmem limit) in bytes."""
    cap = 64 << 20  # conservative default = v7x's 64 MiB/TC
    try:
        info = pltpu.get_tpu_info()
        cap = int(getattr(info, "vmem_capacity_bytes", cap) or cap)
    except Exception:
        pass
    if cap <= (64 << 20):            # v7x
        return 24 << 20, 48 << 20
    return 80 << 20, 100 << 20       # v5e / v6e (128 MiB physical)


# ----------------------------- Pallas kernel -------------------------------

def _ffn_kernel(x_ref, w1_ref, b1_ref, w2_ref, b2_ref, o_ref, acc_ref):
    """One (M-tile, hidden-block) step of: out = relu(x@W1 + b1) @ W2 + b2 + x.

    x_ref/o_ref: (tm, Cp) bf16.  w1_ref: (Cp, thk) bf16 (BN1 scale folded in).
    w2_ref: (thk, Cp) bf16 (BN2 scale folded in).  b1/b2: (1, *) f32 rows.
    acc_ref: (tm, Cp) f32 accumulator across the hidden-block grid axis.
    """
    k = pl.program_id(1)

    @pl.when(k == 0)
    def _():
        acc_ref[...] = jnp.zeros_like(acc_ref)

    # fc1 block: bf16 MXU matmul, f32 accumulation, f32 bias + ReLU epilogue.
    h = jnp.dot(x_ref[...], w1_ref[...], preferred_element_type=jnp.float32)
    h = jnp.maximum(h + b1_ref[...], 0.0)
    # fc2 partial sum for this hidden block; the hidden never leaves VMEM.
    acc_ref[...] += jnp.dot(h.astype(jnp.bfloat16), w2_ref[...],
                            preferred_element_type=jnp.float32)

    @pl.when(k == pl.num_programs(1) - 1)
    def _():
        # DropPath(0.0) is identity; residual add in f32, store bf16.
        y = acc_ref[...] + b2_ref[...] + x_ref[...].astype(jnp.float32)
        o_ref[...] = y.astype(o_ref.dtype)


# ----------------------------- tile planning -------------------------------

def _plan_tiles(M, Cp, Chp, budget, single_buffer_weights):
    """Pick (tm, thk, n_h): M-tile rows, hidden-block width, #hidden blocks."""

    def max_tm(thk, n_h):
        wbuf = 1 if (single_buffer_weights and n_h == 1) else 2
        w_bytes = wbuf * (2 * Cp * thk) * 2            # W1 + W2 blocks, bf16
        for tm in (1024, 512, 256, 128, 64, 32, 16, 8):
            # x/out double-buffered bf16 + f32 acc + epilogue/residual temps
            # (~20*Cp B/row) and f32 hidden + its bf16 copy (~6*thk B/row).
            act = tm * (20 * Cp + 6 * thk)
            if w_bytes + act <= budget:
                return tm
        return 0

    plan = None
    n_h = 1
    while n_h * LANE <= Chp:
        if Chp % (n_h * LANE) == 0:                    # thk stays a lane multiple
            thk = Chp // n_h
            tm = max_tm(thk, n_h)
            if tm >= 128:                              # low-refetch plan is good enough
                plan = (tm, thk, n_h)
                break
            if tm > 0 and plan is None:
                plan = (tm, thk, n_h)
        n_h += 1
    assert plan is not None, "channel count too large for VMEM even with hidden split"
    tm, thk, n_h = plan

    # Clamp tm to the problem and keep M-padding waste small (late pvig stages
    # have small spatial M, e.g. B*14*14).
    tm = min(tm, _round_up(max(M, SUBLANE), SUBLANE))
    while True:
        pad = _round_up(M, tm) - M
        if tm <= SUBLANE or pad < max(tm // 2, SUBLANE):
            break
        tm = max(_round_up(tm // 2, SUBLANE), SUBLANE)
    return tm, thk, n_h


def _build_ffn_call(Mp, Cp, Chp, tm, thk, n_h, vmem_limit,
                    single_buffer_weights, interpret):
    n_m = Mp // tm

    def resident(shape, index_map):
        # Constant-index operands are fetched once; single-buffer them to halve
        # their VMEM footprint (matters most inside v7x's 64 MiB).
        if single_buffer_weights:
            return pl.BlockSpec(shape, index_map, pipeline_mode=pl.Buffered(1))
        return pl.BlockSpec(shape, index_map)

    if n_h == 1:
        w1_spec = resident((Cp, thk), lambda i, k: (0, 0))
        b1_spec = resident((1, thk), lambda i, k: (0, 0))
        w2_spec = resident((thk, Cp), lambda i, k: (0, 0))
    else:
        w1_spec = pl.BlockSpec((Cp, thk), lambda i, k: (0, k))
        b1_spec = pl.BlockSpec((1, thk), lambda i, k: (0, k))
        w2_spec = pl.BlockSpec((thk, Cp), lambda i, k: (k, 0))
    b2_spec = resident((1, Cp), lambda i, k: (0, 0))

    return pl.pallas_call(
        _ffn_kernel,
        out_shape=jax.ShapeDtypeStruct((Mp, Cp), jnp.bfloat16),
        grid=(n_m, n_h),
        in_specs=[
            pl.BlockSpec((tm, Cp), lambda i, k: (i, 0)),   # x: streamed bf16 M-tiles
            w1_spec, b1_spec, w2_spec, b2_spec,
        ],
        out_specs=pl.BlockSpec((tm, Cp), lambda i, k: (i, 0)),
        scratch_shapes=[pltpu.VMEM((tm, Cp), jnp.float32)],
        compiler_params=pltpu.CompilerParams(
            # M-tiles parallel (v7x 2-TC split); hidden-block axis is a reduction.
            # TODO(synk): if profiling shows one v7x TC idle, switch to
            # pltpu.CORE_PARALLEL / an explicit leading core axis.
            dimension_semantics=("parallel", "arbitrary"),
            vmem_limit_bytes=vmem_limit,
        ),
        interpret=interpret,
    )


# ------------------------------ FFN forward --------------------------------

def ffn_forward_flat(x_flat, params, *, interpret=False):
    """Fused FFN on an (M, Cp) bf16 activation slab (NHWC-flattened, channel-padded).

    In a full network, keep activations in this layout across all FFN/grapher
    blocks and convert NCHW <-> flat only once at the model boundary.
    Returns an (M, Cp) bf16 slab.
    """
    w1, b1, w2, b2 = params["w1"], params["b1"], params["w2"], params["b2"]
    M, Cp = x_flat.shape
    Cp_w, Chp = w1.shape
    assert Cp == Cp_w, "activation channel padding must match the weights"
    x_flat = x_flat.astype(jnp.bfloat16)

    budget, vmem_limit = _vmem_budget_bytes()

    def run(single_buffer_weights):
        tm, thk, n_h = _plan_tiles(M, Cp, Chp, budget, single_buffer_weights)
        Mp = _round_up(max(M, SUBLANE), tm)
        xp = x_flat if Mp == M else jnp.pad(x_flat, ((0, Mp - M), (0, 0)))
        call = _build_ffn_call(Mp, Cp, Chp, tm, thk, n_h, vmem_limit,
                               single_buffer_weights, interpret)
        out = call(xp, w1, b1, w2, b2)
        return out[:M] if Mp != M else out

    try:
        return run(True)
    except Exception:
        # TODO(synk): some jax versions reject pl.Buffered(1); fall back to the
        # default double-buffered resident weights (costs VMEM, not correctness).
        return run(False)


def nchw_to_flat(x_nchw, c_pad):
    """One-time model-boundary conversion: NCHW f32 -> (B*H*W, Cp) bf16."""
    B, C, H, W = x_nchw.shape
    x = jnp.transpose(x_nchw, (0, 2, 3, 1)).reshape(B * H * W, C)
    return jnp.pad(x, ((0, 0), (0, c_pad - C))).astype(jnp.bfloat16)


def flat_to_nchw(x_flat, B, C, H, W):
    """One-time model-boundary conversion back to NCHW f32."""
    x = x_flat[:, :C].astype(jnp.float32).reshape(B, H, W, C)
    return jnp.transpose(x, (0, 3, 1, 2))


def ffn_forward(x_nchw, params, *, interpret=False):
    """NCHW convenience wrapper matching the PyTorch module interface (test use).
    In a full pvig network the NCHW<->flat conversion is done once, not per layer."""
    B, C, H, W = x_nchw.shape
    Cp = params["w1"].shape[0]
    y = ffn_forward_flat(nchw_to_flat(x_nchw, Cp), params, interpret=interpret)
    return flat_to_nchw(y, B, C, H, W)


# ------------------------------ parameters ---------------------------------

def make_ffn_params(key, in_features, hidden_features=None, out_features=None):
    """Build FFN params matching PyTorch defaults (Conv2d kaiming_uniform(a=sqrt(5))
    weight + uniform bias; BatchNorm2d eval mode).  Folds conv bias + BN into a
    per-channel scale/bias, then folds the scales into the bf16 weights.
    Returns (kernel_params, raw_f32_params)."""
    hidden_features = hidden_features or in_features
    out_features = out_features or in_features
    assert out_features == in_features, "residual requires out_features == in_features"

    k1, k2, kb = jax.random.split(key, 3)

    def conv1x1(k, cin, cout):
        kw, kbi = jax.random.split(k)
        bound = 1.0 / math.sqrt(cin)                   # kaiming_uniform(a=sqrt(5)) on 1x1
        w = jax.random.uniform(kw, (cin, cout), jnp.float32, -bound, bound)
        b = jax.random.uniform(kbi, (cout,), jnp.float32, -bound, bound)
        return w, b

    def bn_stats(k, c):
        kg, kbta, km, kv = jax.random.split(k, 4)
        gamma = jax.random.uniform(kg, (c,), jnp.float32, 0.5, 1.5)
        beta = 0.1 * jax.random.normal(kbta, (c,), jnp.float32)
        rmean = 0.1 * jax.random.normal(km, (c,), jnp.float32)
        rvar = jax.random.uniform(kv, (c,), jnp.float32, 0.5, 1.5)
        return gamma, beta, rmean, rvar

    w1, cb1 = conv1x1(k1, in_features, hidden_features)
    w2, cb2 = conv1x1(k2, hidden_features, out_features)
    kb1, kb2 = jax.random.split(kb)
    g1, be1, m1, v1 = bn_stats(kb1, hidden_features)
    g2, be2, m2, v2 = bn_stats(kb2, out_features)

    # Fold conv bias + eval-mode BN: scale = g/sqrt(var+eps); bias = beta + (b_conv - mean)*scale
    s1 = g1 / jnp.sqrt(v1 + BN_EPS)
    b1 = be1 + (cb1 - m1) * s1
    s2 = g2 / jnp.sqrt(v2 + BN_EPS)
    b2 = be2 + (cb2 - m2) * s2

    raw = {"w1": w1, "s1": s1, "b1": b1, "w2": w2, "s2": s2, "b2": b2}

    # Fold the per-output-column scales into the weights (exact), pad once to
    # lane multiples (padded bias columns are zero so padded lanes stay zero),
    # and cast weights to bf16 for the MXU.
    Cp = _round_up(in_features, LANE)
    Chp = _round_up(hidden_features, LANE)
    w1f = w1 * s1[None, :]
    w2f = w2 * s2[None, :]

    def pad2(a, r, c):
        return jnp.pad(a, ((0, r - a.shape[0]), (0, c - a.shape[1])))

    def pad_row(a, c):
        return jnp.pad(a.reshape(1, -1), ((0, 0), (0, c - a.shape[0])))

    kernel_params = {
        "w1": pad2(w1f, Cp, Chp).astype(jnp.bfloat16),
        "b1": pad_row(b1, Chp),
        "w2": pad2(w2f, Chp, Cp).astype(jnp.bfloat16),
        "b2": pad_row(b2, Cp),
    }
    return kernel_params, raw


# ------------------------------- reference ----------------------------------

def ffn_reference(x_nchw, raw):
    """Pure-JAX f32 reference of FFN.forward (eval mode)."""
    B, C, H, W = x_nchw.shape
    x2d = jnp.transpose(x_nchw, (0, 2, 3, 1)).reshape(-1, C).astype(jnp.float32)
    h = jnp.maximum(x2d @ raw["w1"] * raw["s1"] + raw["b1"], 0.0)
    y = (h @ raw["w2"]) * raw["s2"] + raw["b2"] + x2d
    return jnp.transpose(y.reshape(B, H, W, C), (0, 3, 1, 2))


# --------------------------------- main --------------------------------------

if __name__ == "__main__":
    key = jax.random.PRNGKey(0)
    kp, kx = jax.random.split(key)

    B, C, H, W = 2, 32, 16, 16
    hidden = 4 * C                                    # pvig-style FFN expansion

    kernel_params, raw_params = make_ffn_params(kp, C, hidden)
    x = jax.random.normal(kx, (B, C, H, W), jnp.float32)

    out = ffn_forward(x, kernel_params)
    out = jax.block_until_ready(out)

    assert out.shape == (B, C, H, W)
    assert bool(jnp.all(jnp.isfinite(out)))

    ref = ffn_reference(x, raw_params)
    rel_err = float(jnp.max(jnp.abs(out - ref)) / (jnp.max(jnp.abs(ref)) + 1e-6))
    assert rel_err < 5e-2, f"relative error too large: {rel_err}"

    print("KERNEL_OK")
</pallas_src>

<mosaic_0001>
module attributes {stable_mosaic.version = 11 : i64} {
  func.func @_ffn_kernel(%arg0: i32, %arg1: i32, %arg2: memref<512x128xbf16, #tpu.memory_space<vmem>>, %arg3: memref<128x128xbf16, #tpu.memory_space<vmem>>, %arg4: memref<1x128xf32, #tpu.memory_space<vmem>>, %arg5: memref<128x128xbf16, #tpu.memory_space<vmem>>, %arg6: memref<1x128xf32, #tpu.memory_space<vmem>>, %arg7: memref<512x128xbf16, #tpu.memory_space<vmem>>, %arg8: memref<512x128xf32, #tpu.memory_space<vmem>>) attributes {dimension_semantics = [#tpu.dimension_semantics<parallel>, #tpu.dimension_semantics<arbitrary>], iteration_bounds = array<i64: 1, 1>, scalar_prefetch = 0 : i64, scratch_operands = 1 : i64, tpu.core_type = #tpu.core_type<tc>, window_params = [{transform_indices = @transform_0, window_bounds = array<i64: 512, 128>}, {pipeline_mode = #tpu.pipeline_mode<synchronous>, transform_indices = @transform_1, window_bounds = array<i64: 128, 128>}, {pipeline_mode = #tpu.pipeline_mode<synchronous>, transform_indices = @transform_2, window_bounds = array<i64: 1, 128>}, {pipeline_mode = #tpu.pipeline_mode<synchronous>, transform_indices = @transform_3, window_bounds = array<i64: 128, 128>}, {pipeline_mode = #tpu.pipeline_mode<synchronous>, transform_indices = @transform_4, window_bounds = array<i64: 1, 128>}, {transform_indices = @transform_5, window_bounds = array<i64: 512, 128>}]} {
    %c0_i32 = arith.constant 0 : i32
    %0 = arith.cmpi eq, %arg1, %c0_i32 : i32
    %1 = arith.extui %0 : i1 to i32
    %c0_i32_0 = arith.constant 0 : i32
    %2 = arith.cmpi ne, %1, %c0_i32_0 : i32
    scf.if %2 {
      %cst_16 = arith.constant 0.000000e+00 : f32
      %20 = vector.broadcast %cst_16 : f32 to vector<512x128xf32>
      %c0_17 = arith.constant 0 : index
      %c0_18 = arith.constant 0 : index
      %21 = vector.load %arg8[%c0_17, %c0_18] : memref<512x128xf32, #tpu.memory_space<vmem>>, vector<512x128xf32>
      tpu.vector_store %arg8[%c0_17, %c0_18], %20 {strides = array<i32>} : memref<512x128xf32, #tpu.memory_space<vmem>>, vector<512x128xf32>,
    } else {
    }
    %c0 = arith.constant 0 : index
    %c0_1 = arith.constant 0 : index
    %3 = vector.load %arg2[%c0, %c0_1] : memref<512x128xbf16, #tpu.memory_space<vmem>>, vector<512x128xbf16>
    %c0_2 = arith.constant 0 : index
    %c0_3 = arith.constant 0 : index
    %4 = vector.load %arg3[%c0_2, %c0_3] : memref<128x128xbf16, #tpu.memory_space<vmem>>, vector<128x128xbf16>
    %cst = arith.constant dense<0.000000e+00> : vector<512x128xf32>
    %5 = tpu.matmul %3, %4, %cst {dimension_numbers = #tpu.dot_dimension_numbers<[1], [0], [0], [1], [0, 0, 1, 1], [], []>} : vector<512x128xbf16>, vector<128x128xbf16>, vector<512x128xf32> -> vector<512x128xf32>
    %c0_4 = arith.constant 0 : index
    %c0_5 = arith.constant 0 : index
    %6 = vector.load %arg4[%c0_4, %c0_5] : memref<1x128xf32, #tpu.memory_space<vmem>>, vector<1x128xf32>
    %7 = vector.broadcast %6 : vector<1x128xf32> to vector<512x128xf32>
    %8 = arith.addf %5, %7 : vector<512x128xf32>
    %cst_6 = arith.constant 0.000000e+00 : f32
    %9 = vector.broadcast %cst_6 : f32 to vector<512x128xf32>
    %10 = arith.maximumf %8, %9 : vector<512x128xf32>
    %c0_7 = arith.constant 0 : index
    %c0_8 = arith.constant 0 : index
    %11 = vector.load %arg8[%c0_7, %c0_8] : memref<512x128xf32, #tpu.memory_space<vmem>>, vector<512x128xf32>
    %12 = arith.truncf %10 : vector<512x128xf32> to vector<512x128xbf16>
    %c0_9 = arith.constant 0 : index
    %c0_10 = arith.constant 0 : index
    %13 = vector.load %arg5[%c0_9, %c0_10] : memref<128x128xbf16, #tpu.memory_space<vmem>>, vector<128x128xbf16>
    %cst_11 = arith.constant dense<0.000000e+00> : vector<512x128xf32>
    %14 = tpu.matmul %12, %13, %cst_11 {dimension_numbers = #tpu.dot_dimension_numbers<[1], [0], [0], [1], [0, 0, 1, 1], [], []>} : vector<512x128xbf16>, vector<128x128xbf16>, vector<512x128xf32> -> vector<512x128xf32>
    %15 = arith.addf %11, %14 : vector<512x128xf32>
    %c0_12 = arith.constant 0 : index
    %c0_13 = arith.constant 0 : index
    %16 = vector.load %arg8[%c0_12, %c0_13] : memref<512x128xf32, #tpu.memory_space<vmem>>, vector<512x128xf32>
    tpu.vector_store %arg8[%c0_12, %c0_13], %15 {strides = array<i32>} : memref<512x128xf32, #tpu.memory_space<vmem>>, vector<512x128xf32>,
    %c0_i32_14 = arith.constant 0 : i32
    %17 = arith.cmpi eq, %arg1, %c0_i32_14 : i32
    %18 = arith.extui %17 : i1 to i32
    %c0_i32_15 = arith.constant 0 : i32
    %19 = arith.cmpi ne, %18, %c0_i32_15 : i32
    scf.if %19 {
      %c0_16 = arith.constant 0 : index
      %c0_17 = arith.constant 0 : index
      %20 = vector.load %arg8[%c0_16, %c0_17] : memref<512x128xf32, #tpu.memory_space<vmem>>, vector<512x128xf32>
      %c0_18 = arith.constant 0 : index
      %c0_19 = arith.constant 0 : index
      %21 = vector.load %arg6[%c0_18, %c0_19] : memref<1x128xf32, #tpu.memory_space<vmem>>, vector<1x128xf32>
      %22 = vector.broadcast %21 : vector<1x128xf32> to vector<512x128xf32>
      %23 = arith.addf %20, %22 : vector<512x128xf32>
      %c0_20 = arith.constant 0 : index
      %c0_21 = arith.constant 0 : index
      %24 = vector.load %arg2[%c0_20, %c0_21] : memref<512x128xbf16, #tpu.memory_space<vmem>>, vector<512x128xbf16>
      %25 = arith.extf %24 : vector<512x128xbf16> to vector<512x128xf32>
      %26 = arith.addf %23, %25 : vector<512x128xf32>
      %27 = arith.truncf %26 : vector<512x128xf32> to vector<512x128xbf16>
      %c0_22 = arith.constant 0 : index
      %c0_23 = arith.constant 0 : index
      %28 = vector.load %arg7[%c0_22, %c0_23] : memref<512x128xbf16, #tpu.memory_space<vmem>>, vector<512x128xbf16>
      tpu.vector_store %arg7[%c0_22, %c0_23], %27 {strides = array<i32>} : memref<512x128xbf16, #tpu.memory_space<vmem>>, vector<512x128xbf16>,
    } else {
    }
    return
  }
  func.func @transform_0(%arg0: i32, %arg1: i32) -> (i32, i32) {
    %c0_i32 = arith.constant 0 : i32
    %c0_i32_0 = arith.constant 0 : i32
    return %arg0, %c0_i32 : i32, i32
  }
  func.func @transform_1(%arg0: i32, %arg1: i32) -> (i32, i32) {
    %c0_i32 = arith.constant 0 : i32
    %c0_i32_0 = arith.constant 0 : i32
    %c0_i32_1 = arith.constant 0 : i32
    return %c0_i32, %c0_i32_0 : i32, i32
  }
  func.func @transform_2(%arg0: i32, %arg1: i32) -> (i32, i32) {
    %c0_i32 = arith.constant 0 : i32
    %c0_i32_0 = arith.constant 0 : i32
    %c0_i32_1 = arith.constant 0 : i32
    return %c0_i32, %c0_i32_0 : i32, i32
  }
  func.func @transform_3(%arg0: i32, %arg1: i32) -> (i32, i32) {
    %c0_i32 = arith.constant 0 : i32
    %c0_i32_0 = arith.constant 0 : i32
    %c0_i32_1 = arith.constant 0 : i32
    return %c0_i32, %c0_i32_0 : i32, i32
  }
  func.func @transform_4(%arg0: i32, %arg1: i32) -> (i32, i32) {
    %c0_i32 = arith.constant 0 : i32
    %c0_i32_0 = arith.constant 0 : i32
    %c0_i32_1 = arith.constant 0 : i32
    return %c0_i32, %c0_i32_0 : i32, i32
  }
  func.func @transform_5(%arg0: i32, %arg1: i32) -> (i32, i32) {
    %c0_i32 = arith.constant 0 : i32
    %c0_i32_0 = arith.constant 0 : i32
    return %arg0, %c0_i32 : i32, i32
  }
}

module attributes {stable_mosaic.version = 11 : i64} {
  func.func @_ffn_kernel(%arg0: i32, %arg1: i32, %arg2: memref<512x128xbf16, #tpu.memory_space<vmem>>, %arg3: memref<128x128xbf16, #tpu.memory_space<vmem>>, %arg4: memref<1x128xf32, #tpu.memory_space<vmem>>, %arg5: memref<128x128xbf16, #tpu.memory_space<vmem>>, %arg6: memref<1x128xf32, #tpu.memory_space<vmem>>, %arg7: memref<512x128xbf16, #tpu.memory_space<vmem>>, %arg8: memref<512x128xf32, #tpu.memory_space<vmem>>) attributes {dimension_semantics = [#tpu.dimension_semantics<parallel>, #tpu.dimension_semantics<arbitrary>], iteration_bounds = array<i64: 1, 1>, scalar_prefetch = 0 : i64, scratch_operands = 1 : i64, tpu.core_type = #tpu.core_type<tc>, window_params = [{transform_indices = @transform_0, window_bounds = array<i64: 512, 128>}, {pipeline_mode = #tpu.pipeline_mode<synchronous>, transform_indices = @transform_1, window_bounds = array<i64: 128, 128>}, {pipeline_mode = #tpu.pipeline_mode<synchronous>, transform_indices = @transform_2, window_bounds = array<i64: 1, 128>}, {pipeline_mode = #tpu.pipeline_mode<synchronous>, transform_indices = @transform_3, window_bounds = array<i64: 128, 128>}, {pipeline_mode = #tpu.pipeline_mode<synchronous>, transform_indices = @transform_4, window_bounds = array<i64: 1, 128>}, {transform_indices = @transform_5, window_bounds = array<i64: 512, 128>}]} {
    %c0_i32 = arith.constant 0 : i32
    %0 = arith.cmpi eq, %arg1, %c0_i32 : i32
    %1 = arith.extui %0 : i1 to i32
    %c0_i32_0 = arith.constant 0 : i32
    %2 = arith.cmpi ne, %1, %c0_i32_0 : i32
    scf.if %2 {
      %cst_16 = arith.constant 0.000000e+00 : f32
      %20 = vector.broadcast %cst_16 : f32 to vector<512x128xf32>
      %c0_17 = arith.constant 0 : index
      %c0_18 = arith.constant 0 : index
      %21 = vector.load %arg8[%c0_17, %c0_18] : memref<512x128xf32, #tpu.memory_space<vmem>>, vector<512x128xf32>
      tpu.vector_store %arg8[%c0_17, %c0_18], %20 {strides = array<i32>} : memref<512x128xf32, #tpu.memory_space<vmem>>, vector<512x128xf32>,
    } else {
    }
    %c0 = arith.constant 0 : index
    %c0_1 = arith.constant 0 : index
    %3 = vector.load %arg2[%c0, %c0_1] : memref<512x128xbf16, #tpu.memory_space<vmem>>, vector<512x128xbf16>
    %c0_2 = arith.constant 0 : index
    %c0_3 = arith.constant 0 : index
    %4 = vector.load %arg3[%c0_2, %c0_3] : memref<128x128xbf16, #tpu.memory_space<vmem>>, vector<128x128xbf16>
    %cst = arith.constant dense<0.000000e+00> : vector<512x128xf32>
    %5 = tpu.matmul %3, %4, %cst {dimension_numbers = #tpu.dot_dimension_numbers<[1], [0], [0], [1], [0, 0, 1, 1], [], []>} : vector<512x128xbf16>, vector<128x128xbf16>, vector<512x128xf32> -> vector<512x128xf32>
    %c0_4 = arith.constant 0 : index
    %c0_5 = arith.constant 0 : index
    %6 = vector.load %arg4[%c0_4, %c0_5] : memref<1x128xf32, #tpu.memory_space<vmem>>, vector<1x128xf32>
    %7 = vector.broadcast %6 : vector<1x128xf32> to vector<512x128xf32>
    %8 = arith.addf %5, %7 : vector<512x128xf32>
    %cst_6 = arith.constant 0.000000e+00 : f32
    %9 = vector.broadcast %cst_6 : f32 to vector<512x128xf32>
    %10 = arith.maximumf %8, %9 : vector<512x128xf32>
    %c0_7 = arith.constant 0 : index
    %c0_8 = arith.constant 0 : index
    %11 = vector.load %arg8[%c0_7, %c0_8] : memref<512x128xf32, #tpu.memory_space<vmem>>, vector<512x128xf32>
    %12 = arith.truncf %10 : vector<512x128xf32> to vector<512x128xbf16>
    %c0_9 = arith.constant 0 : index
    %c0_10 = arith.constant 0 : index
    %13 = vector.load %arg5[%c0_9, %c0_10] : memref<128x128xbf16, #tpu.memory_space<vmem>>, vector<128x128xbf16>
    %cst_11 = arith.constant dense<0.000000e+00> : vector<512x128xf32>
    %14 = tpu.matmul %12, %13, %cst_11 {dimension_numbers = #tpu.dot_dimension_numbers<[1], [0], [0], [1], [0, 0, 1, 1], [], []>} : vector<512x128xbf16>, vector<128x128xbf16>, vector<512x128xf32> -> vector<512x128xf32>
    %15 = arith.addf %11, %14 : vector<512x128xf32>
    %c0_12 = arith.constant 0 : index
    %c0_13 = arith.constant 0 : index
    %16 = vector.load %arg8[%c0_12, %c0_13] : memref<512x128xf32, #tpu.memory_space<vmem>>, vector<512x128xf32>
    tpu.vector_store %arg8[%c0_12, %c0_13], %15 {strides = array<i32>} : memref<512x128xf32, #tpu.memory_space<vmem>>, vector<512x128xf32>,
    %c0_i32_14 = arith.constant 0 : i32
    %17 = arith.cmpi eq, %arg1, %c0_i32_14 : i32
    %18 = arith.extui %17 : i1 to i32
    %c0_i32_15 = arith.constant 0 : i32
    %19 = arith.cmpi ne, %18, %c0_i32_15 : i32
    scf.if %19 {
      %c0_16 = arith.constant 0 : index
      %c0_17 = arith.constant 0 : index
      %20 = vector.load %arg8[%c0_16, %c0_17] : memref<512x128xf32, #tpu.memory_space<vmem>>, vector<512x128xf32>
      %c0_18 = arith.constant 0 : index
      %c0_19 = arith.constant 0 : index
      %21 = vector.load %arg6[%c0_18, %c0_19] : memref<1x128xf32, #tpu.memory_space<vmem>>, vector<1x128xf32>
      %22 = vector.broadcast %21 : vector<1x128xf32> to vector<512x128xf32>
      %23 = arith.addf %20, %22 : vector<512x128xf32>
      %c0_20 = arith.constant 0 : index
      %c0_21 = arith.constant 0 : index
      %24 = vector.load %arg2[%c0_20, %c0_21] : memref<512x128xbf16, #tpu.memory_space<vmem>>, vector<512x128xbf16>
      %25 = arith.extf %24 : vector<512x128xbf16> to vector<512x128xf32>
      %26 = arith.addf %23, %25 : vector<512x128xf32>
      %27 = arith.truncf %26 : vector<512x128xf32> to vector<512x128xbf16>
      %c0_22 = arith.constant 0 : index
      %c0_23 = arith.constant 0 : index
      %28 = vector.load %arg7[%c0_22, %c0_23] : memref<512x128xbf16, #tpu.memory_space<vmem>>, vector<512x128xbf16>
      tpu.vector_store %arg7[%c0_22, %c0_23], %27 {strides = array<i32>} : memref<512x128xbf16, #tpu.memory_space<vmem>>, vector<512x128xbf16>,
    } else {
    }
    return
  }
  func.func @transform_0(%arg0: i32, %arg1: i32) -> (i32, i32) {
    %c0_i32 = arith.constant 0 : i32
    %c0_i32_0 = arith.constant 0 : i32
    return %arg0, %c0_i32 : i32, i32
  }
  func.func @transform_1(%arg0: i32, %arg1: i32) -> (i32, i32) {
    %c0_i32 = arith.constant 0 : i32
    %c0_i32_0 = arith.constant 0 : i32
    %c0_i32_1 = arith.constant 0 : i32
    return %c0_i32, %c0_i32_0 : i32, i32
  }
  func.func @transform_2(%arg0: i32, %arg1: i32) -> (i32, i32) {
    %c0_i32 = arith.constant 0 : i32
    %c0_i32_0 = arith.constant 0 : i32
    %c0_i32_1 = arith.constant 0 : i32
    return %c0_i32, %c0_i32_0 : i32, i32
  }
  func.func @transform_3(%arg0: i32, %arg1: i32) -> (i32, i32) {
    %c0_i32 = arith.constant 0 : i32
    %c0_i32_0 = arith.constant 0 : i32
    %c0_i32_1 = arith.constant 0 : i32
    return %c0_i32, %c0_i32_0 : i32, i32
  }
  func.func @transform_4(%arg0: i32, %arg1: i32) -> (i32, i32) {
    %c0_i32 = arith.constant 0 : i32
    %c0_i32_0 = arith.constant 0 : i32
    %c0_i32_1 = arith.constant 0 : i32
    return %c0_i32, %c0_i32_0 : i32, i32
  }
  func.func @transform_5(%arg0: i32, %arg1: i32) -> (i32, i32) {
    %c0_i32 = arith.constant 0 : i32
    %c0_i32_0 = arith.constant 0 : i32
    return %arg0, %c0_i32 : i32, i32
  }
}

</mosaic_0001>

<bundles_post_ra>
// kernel: tpu_custom_call.1
= control target key start
LH: loop header
LB: loop body
LE: loop exit
PB: predicated region body
PF: predicated region fallthrough
CT: control target
= control target key end

     0   :  { %10 = vsyncpa [#allocation4], 0  ;;  %s2539_s0 = inlined_call_operand.hbm [shape: bf16[512,128], index: 0, kind: input, shape index: {}]   ;;  %s2540_s1 = inlined_call_operand.hbm [shape: bf16[128,128], index: 1, kind: input, shape index: {}]   ;;  %s2541_s2 = inlined_call_operand.vmem [shape: f32[1,128], index: 2, kind: input, shape index: {}]   ;;  %s2542_s3 = inlined_call_operand.hbm [shape: bf16[128,128], index: 3, kind: input, shape index: {}]   ;;  %s2543_s4 = inlined_call_operand.vmem [shape: f32[1,128], index: 4, kind: input, shape index: {}]   ;;  %s2544_s5 = inlined_call_operand.hbm [shape: bf16[512,128], index: 5, kind: output, shape index: {}]  }
   0x1   :  { %11 = vsyncpa [#allocation7], 0 }
   0x2   :  { %12 = vsyncpa [#allocation5], 0  ;;  %s30_s20 = sshll.u32 %s2540_s1, 4  ;;  %s2341_s21 = smov [#allocation6]   ;;  %s31_s20 = int_to_ptr.hbm [resolvable:$true] %s30_s20 }
   0x3   :  { %s32_s22 = sshll.u32 %s2341_s21, 4  ;;  %s17_s25 = sshll.u32 %s2539_s0, 4  ;;  %s33_s22 = int_to_ptr.vmem [resolvable:$true] %s32_s22  ;;  %s18_s25 = int_to_ptr.hbm [resolvable:$true] %s17_s25 }
   0x4   :  { %s2342_s26 = smov 64   ;;  %s2343_s27 = smov 4  }
   0x5   :  { %38 = dma.hbm_to_vmem [thread:$0]  %s31_s20, 1024, %s33_s22, [#allocation7], %s2342_s26, %s2342_s26, %s2343_s27  }
   0x6   :  { %s2344_s28 = smov [#allocation3]   ;;  %s45_s1 = sshll.u32 %s2542_s3, 4  ;;  %s46_s1 = int_to_ptr.hbm [resolvable:$true] %s45_s1 }
   0x7   :  { %s19_s29 = sshll.u32 %s2344_s28, 4  ;;  %s2345_s0 = smov [#allocation8]   ;;  %s20_s29 = int_to_ptr.vmem [resolvable:$true] %s19_s29 }
   0x8   :  { %25 = dma.hbm_to_vmem [thread:$0]  %s18_s25, 4096, %s20_s29, [#allocation4], %s2342_s26, %s2342_s26, %s2343_s27  }
   0x9   :  { %s47_s7 = sshll.u32 %s2345_s0, 4  ;;  %s48_s7 = int_to_ptr.vmem [resolvable:$true] %s47_s7 }
   0xa   :  { %53 = dma.hbm_to_vmem [thread:$0]  %s46_s1, 1024, %s48_s7, [#allocation7], %s2342_s26, %s2342_s26, %s2343_s27  }
   0xb   :  { %2335 = dma.done.wait [#allocation4], 4096  }
   0xc   :  { %2336 = vsyncadd [#allocation4], 4294963200 }
   0xd   :  { %2337 = dma.done.wait [#allocation7], 2048  }
   0xe   :  { %2338 = vsyncadd [#allocation7], 4294965248  ;;  %v1856_v0 = vld [vmem:[#allocation6 + $0x38] sm:$0xff]  ;;  %v1855_v1 = vld [vmem:[#allocation6 + $0x30] sm:$0xff]  ;;  %s1611_s13 = sshll.u32 %s2544_s5, 4  ;;  %s1612_s13 = int_to_ptr.hbm [resolvable:$true] %s1611_s13 }
   0xf   :  { %460 = vmatpush.bf16.msra.mxu0 %v1856_v0  ;;  %2215 = vmatpush.bf16.msra.mxu2 %v1856_v0  ;;  %v1854_v2 = vld [vmem:[#allocation6 + $0x28] sm:$0xff]  ;;  %v1853_v3 = vld [vmem:[#allocation6 + $0x20] sm:$0xff]  ;;  %v1852_v4 = vld [vmem:[#allocation6 + $0x18] sm:$0xff] }
  0x10   :  { %v1851_v5 = vld [vmem:[#allocation6 + $0x10] sm:$0xff]  ;;  %v1850_v6 = vld [vmem:[#allocation6 + $0x8] sm:$0xff]  ;;  %v1849_v7 = vld [vmem:[#allocation6] sm:$0xff] }
  0x11   :  { %v1817_v8 = vld [vmem:[#allocation3] sm:$0xff]  ;;  %v1818_v10 = vld [vmem:[#allocation3 + $0x8] sm:$0xff]  ;;  %v1819_v12 = vld [vmem:[#allocation3 + $0x10] sm:$0xff] }
  0x12   :  { %v1833_v9 = vld [vmem:[#allocation3 + $0x80] sm:$0xff]  ;;  %v1834_v11 = vld [vmem:[#allocation3 + $0x88] sm:$0xff]  ;;  %v1835_v13 = vld [vmem:[#allocation3 + $0x90] sm:$0xff] }
  0x13   :  { %461 = vmatpush.bf16.msra.mxu0 %v1855_v1  ;;  %2216 = vmatpush.bf16.msra.mxu2 %v1855_v1  ;;  %v1820_v14 = vld [vmem:[#allocation3 + $0x18] sm:$0xff]  ;;  %v1821_v16 = vld [vmem:[#allocation3 + $0x20] sm:$0xff]  ;;  %v1822_v19 = vld [vmem:[#allocation3 + $0x28] sm:$0xff] }
  0x14   :  { %v1836_v15 = vld [vmem:[#allocation3 + $0x98] sm:$0xff]  ;;  %v1837_v17 = vld [vmem:[#allocation3 + $0xa0] sm:$0xff]  ;;  %v1838_v20 = vld [vmem:[#allocation3 + $0xa8] sm:$0xff] }
  0x15   :  { %v1864_v18 = vld [vmem:[#allocation8 + $0x38] sm:$0xff]  ;;  %v1863_v21 = vld [vmem:[#allocation8 + $0x30] sm:$0xff]  ;;  %v1862_v22 = vld [vmem:[#allocation8 + $0x28] sm:$0xff] }
  0x16   :  { %853 = vmatpush.bf16.msra.mxu1 %v1864_v18  ;;  %2223 = vmatpush.bf16.msra.mxu3 %v1864_v18  ;;  %v1861_v23 = vld [vmem:[#allocation8 + $0x20] sm:$0xff]  ;;  %v1860_v24 = vld [vmem:[#allocation8 + $0x18] sm:$0xff]  ;;  %v1823_v25 = vld [vmem:[#allocation3 + $0x30] sm:$0xff] }
  0x17   :  { %462 = vmatpush.bf16.msra.mxu0 %v1854_v2  ;;  %2217 = vmatpush.bf16.msra.mxu2 %v1854_v2  ;;  %v1839_v26 = vld [vmem:[#allocation3 + $0xb0] sm:$0xff]  ;;  %v1858_v28 = vld [vmem:[#allocation8 + $0x8] sm:$0xff]  ;;  %v1857_v29 = vld [vmem:[#allocation8] sm:$0xff] }
  0x18   :  { %v1859_v27 = vld [vmem:[#allocation8 + $0x10] sm:$0xff]  ;;  %v1824_v30 = vld [vmem:[#allocation3 + $0x38] sm:$0xff]  ;;  %v1825_v32 = vld [vmem:[#allocation3 + $0x40] sm:$0xff] }
  0x19   :  { %v1840_v31 = vld [vmem:[#allocation3 + $0xb8] sm:$0xff]  ;;  %v1841_v33 = vld [vmem:[#allocation3 + $0xc0] sm:$0xff]  ;;  %v1826_v46 = vld [vmem:[#allocation3 + $0x48] sm:$0xff] }
  0x1a   :  { %854 = vmatpush.bf16.msra.mxu1 %v1863_v21  ;;  %2224 = vmatpush.bf16.msra.mxu3 %v1863_v21  ;;  %v2398_v35 = vld [vmem:[%s2541_s2] ss:$0 sm:$0xff]  ;;  %v1842_v47 = vld [vmem:[#allocation3 + $0xc8] sm:$0xff]  ;;  %v1827_v62 = vld [vmem:[#allocation3 + $0x50] sm:$0xff] }
  0x1b   :  { %463 = vmatpush.bf16.msra.mxu0 %v1853_v3  ;;  %2218 = vmatpush.bf16.msra.mxu2 %v1853_v3  ;;  %v1843_v63 = vld [vmem:[#allocation3 + $0xd0] sm:$0xff] }
  0x1e   :  { %855 = vmatpush.bf16.msra.mxu1 %v1862_v22  ;;  %2225 = vmatpush.bf16.msra.mxu3 %v1862_v22 }
  0x1f   :  { %464 = vmatpush.bf16.msra.mxu0 %v1852_v4  ;;  %2219 = vmatpush.bf16.msra.mxu2 %v1852_v4 }
  0x22   :  { %856 = vmatpush.bf16.msra.mxu1 %v1861_v23  ;;  %2226 = vmatpush.bf16.msra.mxu3 %v1861_v23 }
  0x23   :  { %465 = vmatpush.bf16.msra.mxu0 %v1851_v5  ;;  %2220 = vmatpush.bf16.msra.mxu2 %v1851_v5 }
  0x26   :  { %857 = vmatpush.bf16.msra.mxu1 %v1860_v24  ;;  %2227 = vmatpush.bf16.msra.mxu3 %v1860_v24 }
  0x27   :  { %466 = vmatpush.bf16.msra.mxu0 %v1850_v6  ;;  %2221 = vmatpush.bf16.msra.mxu2 %v1850_v6 }
  0x2a   :  { %858 = vmatpush.bf16.msra.mxu1 %v1859_v27  ;;  %2228 = vmatpush.bf16.msra.mxu3 %v1859_v27 }
  0x2b   :  { %467 = vmatpush.bf16.msra.mxu0 %v1849_v7  ;;  %2222 = vmatpush.bf16.msra.mxu2 %v1849_v7 }
  0x2e   :  { %468 = vmatmul.bf16.vlgmr.msra.gmra.mxu0 %v1817_v8  ;;  %548 = vmatmul.bf16.vlgmr.msra.gmra.mxu2 %v1833_v9 }
  0x2f   :  { %859 = vmatpush.bf16.msra.mxu1 %v1858_v28  ;;  %2229 = vmatpush.bf16.msra.mxu3 %v1858_v28 }
  0x33   :  { %860 = vmatpush.bf16.msra.mxu1 %v1857_v29  ;;  %2230 = vmatpush.bf16.msra.mxu3 %v1857_v29 }
  0x3e   :  { %473 = vmatmul.bf16.gmra.mxu0 %v1818_v10  ;;  %553 = vmatmul.bf16.gmra.mxu2 %v1834_v11 }
  0x4e   :  { %478 = vmatmul.bf16.gmra.mxu0 %v1819_v12  ;;  %558 = vmatmul.bf16.gmra.mxu2 %v1835_v13 }
  0x5e   :  { %483 = vmatmul.bf16.gmra.mxu0 %v1820_v14  ;;  %563 = vmatmul.bf16.gmra.mxu2 %v1836_v15  ;;  %v1828_v14 = vld [vmem:[#allocation3 + $0x58] sm:$0xff] }
  0x5f   :  { %v1844_v15 = vld [vmem:[#allocation3 + $0xd8] sm:$0xff] }
  0x6e   :  { %488 = vmatmul.bf16.gmra.mxu0 %v1821_v16  ;;  %568 = vmatmul.bf16.gmra.mxu2 %v1837_v17 }
  0x7e   :  { %493 = vmatmul.bf16.gmra.mxu0 %v1822_v19  ;;  %573 = vmatmul.bf16.gmra.mxu2 %v1838_v20 }
  0x8e   :  { %498 = vmatmul.bf16.gmra.mxu0 %v1823_v25  ;;  %578 = vmatmul.bf16.gmra.mxu2 %v1839_v26 }
  0x9e   :  { %503 = vmatmul.bf16.gmra.mxu0 %v1824_v30  ;;  %583 = vmatmul.bf16.gmra.mxu2 %v1840_v31  ;;  %v1829_v30 = vld [vmem:[#allocation3 + $0x60] sm:$0xff] }
  0x9f   :  { %v1845_v31 = vld [vmem:[#allocation3 + $0xe0] sm:$0xff] }
  0xab   :  { %v469_v34 = vpop.f32.mrf.mxu0 }
  0xac   :  { %v470_v36 = vadd.f32 %v2398_v35, %v469_v34 }
  0xae   :  { %508 = vmatmul.bf16.gmra.mxu0 %v1825_v32  ;;  %588 = vmatmul.bf16.gmra.mxu2 %v1841_v33  ;;  %v629_v39 = vmax.f32 %v470_v36, 0.0 }
  0xb1   :  { %v549_v37 = vpop.f32.mrf.mxu2 }
  0xb2   :  { %v550_v42 = vadd.f32 %v2398_v35, %v549_v37 }
  0xb3   :  { %v471_v38 = vpop.f32.mrf.mxu0 }
  0xb4   :  { %v472_v40 = vadd.f32 %v2398_v35, %v471_v38  ;;  %v661_v49 = vmax.f32 %v550_v42, 0.0 }
  0xb6   :  { %v630_v41 = vmax.f32 %v472_v40, 0.0 }
  0xb8   :  { %v757_v43 = vpack.c.bf16 %v630_v41, %v629_v39 }
  0xb9   :  { %v551_v44 = vpop.f32.mrf.mxu2 }
  0xba   :  { %v552_v45 = vadd.f32 %v2398_v35, %v551_v44  ;;  %861 = vmatmul.bf16.vlgmr.msra.gmra.mxu1 %v757_v43 }
  0xbb   :  { %v474_v48 = vpop.f32.mrf.mxu0 }
  0xbc   :  { %v662_v50 = vmax.f32 %v552_v45, 0.0  ;;  %v475_v52 = vadd.f32 %v2398_v35, %v474_v48  ;;  %v1846_v48 = vld [vmem:[#allocation3 + $0xe8] sm:$0xff] }
  0xbe   :  { %513 = vmatmul.bf16.gmra.mxu0 %v1826_v46  ;;  %593 = vmatmul.bf16.gmra.mxu2 %v1842_v47  ;;  %v773_v51 = vpack.c.bf16 %v662_v50, %v661_v49  ;;  %v631_v55 = vmax.f32 %v475_v52, 0.0  ;;  %v1830_v47 = vld [vmem:[#allocation3 + $0x68] sm:$0xff] }
  0xc0   :  { %941 = vmatmul.bf16.vlgmr.msra.gmra.mxu3 %v773_v51 }
  0xc1   :  { %v554_v53 = vpop.f32.mrf.mxu2 }
  0xc2   :  { %v555_v58 = vadd.f32 %v2398_v35, %v554_v53 }
  0xc3   :  { %v476_v54 = vpop.f32.mrf.mxu0 }
  0xc4   :  { %v477_v56 = vadd.f32 %v2398_v35, %v476_v54  ;;  %v663_v1 = vmax.f32 %v555_v58, 0.0 }
  0xc6   :  { %v632_v57 = vmax.f32 %v477_v56, 0.0 }
  0xc8   :  { %v758_v59 = vpack.c.bf16 %v632_v57, %v631_v55 }
  0xc9   :  { %v556_v60 = vpop.f32.mrf.mxu2 }
  0xca   :  { %v557_v61 = vadd.f32 %v2398_v35, %v556_v60  ;;  %866 = vmatmul.bf16.gmra.mxu1 %v758_v59 }
  0xcb   :  { %v479_v0 = vpop.f32.mrf.mxu0 }
  0xcc   :  { %v664_v2 = vmax.f32 %v557_v61, 0.0  ;;  %v480_v4 = vadd.f32 %v2398_v35, %v479_v0  ;;  %v1847_v0 = vld [vmem:[#allocation3 + $0xf0] sm:$0xff] }
  0xce   :  { %518 = vmatmul.bf16.gmra.mxu0 %v1827_v62  ;;  %598 = vmatmul.bf16.gmra.mxu2 %v1843_v63  ;;  %v774_v3 = vpack.c.bf16 %v664_v2, %v663_v1  ;;  %v633_v7 = vmax.f32 %v480_v4, 0.0  ;;  %v1831_v63 = vld [vmem:[#allocation3 + $0x70] sm:$0xff] }
  0xd0   :  { %946 = vmatmul.bf16.gmra.mxu3 %v774_v3 }
  0xd1   :  { %v559_v5 = vpop.f32.mrf.mxu2 }
  0xd2   :  { %v560_v10 = vadd.f32 %v2398_v35, %v559_v5 }
  0xd3   :  { %v481_v6 = vpop.f32.mrf.mxu0 }
  0xd4   :  { %v482_v8 = vadd.f32 %v2398_v35, %v481_v6  ;;  %v665_v17 = vmax.f32 %v560_v10, 0.0 }
  0xd6   :  { %v634_v9 = vmax.f32 %v482_v8, 0.0 }
  0xd8   :  { %v759_v11 = vpack.c.bf16 %v634_v9, %v633_v7 }
  0xd9   :  { %v561_v12 = vpop.f32.mrf.mxu2 }
  0xda   :  { %v562_v13 = vadd.f32 %v2398_v35, %v561_v12  ;;  %871 = vmatmul.bf16.gmra.mxu1 %v759_v11 }
  0xdb   :  { %v484_v16 = vpop.f32.mrf.mxu0 }
  0xdc   :  { %v666_v18 = vmax.f32 %v562_v13, 0.0  ;;  %v485_v20 = vadd.f32 %v2398_v35, %v484_v16  ;;  %v1848_v16 = vld [vmem:[#allocation3 + $0xf8] sm:$0xff] }
  0xde   :  { %523 = vmatmul.bf16.gmra.mxu0 %v1828_v14  ;;  %603 = vmatmul.bf16.gmra.mxu2 %v1844_v15  ;;  %v775_v19 = vpack.c.bf16 %v666_v18, %v665_v17  ;;  %v635_v23 = vmax.f32 %v485_v20, 0.0  ;;  %v1832_v15 = vld [vmem:[#allocation3 + $0x78] sm:$0xff] }
  0xe0   :  { %951 = vmatmul.bf16.gmra.mxu3 %v775_v19 }
  0xe1   :  { %v564_v21 = vpop.f32.mrf.mxu2 }
  0xe2   :  { %v565_v26 = vadd.f32 %v2398_v35, %v564_v21 }
  0xe3   :  { %v486_v22 = vpop.f32.mrf.mxu0 }
  0xe4   :  { %v487_v24 = vadd.f32 %v2398_v35, %v486_v22  ;;  %v667_v33 = vmax.f32 %v565_v26, 0.0 }
  0xe6   :  { %v636_v25 = vmax.f32 %v487_v24, 0.0 }
  0xe8   :  { %v760_v27 = vpack.c.bf16 %v636_v25, %v635_v23 }
  0xe9   :  { %v566_v28 = vpop.f32.mrf.mxu2 }
  0xea   :  { %v567_v29 = vadd.f32 %v2398_v35, %v566_v28  ;;  %876 = vmatmul.bf16.gmra.mxu1 %v760_v27 }
  0xeb   :  { %v489_v32 = vpop.f32.mrf.mxu0 }
  0xec   :  { %v668_v34 = vmax.f32 %v567_v29, 0.0  ;;  %v490_v37 = vadd.f32 %v2398_v35, %v489_v32 }
  0xee   :  { %528 = vmatmul.bf16.gmra.mxu0 %v1829_v30  ;;  %608 = vmatmul.bf16.gmra.mxu2 %v1845_v31  ;;  %v776_v36 = vpack.c.bf16 %v668_v34, %v667_v33  ;;  %v637_v40 = vmax.f32 %v490_v37, 0.0 }
  0xf0   :  { %956 = vmatmul.bf16.gmra.mxu3 %v776_v36 }
  0xf1   :  { %v569_v38 = vpop.f32.mrf.mxu2 }
  0xf2   :  { %v570_v43 = vadd.f32 %v2398_v35, %v569_v38 }
  0xf3   :  { %v491_v39 = vpop.f32.mrf.mxu0 }
  0xf4   :  { %v492_v41 = vadd.f32 %v2398_v35, %v491_v39  ;;  %v669_v50 = vmax.f32 %v570_v43, 0.0 }
  0xf6   :  { %v638_v42 = vmax.f32 %v492_v41, 0.0 }
  0xf8   :  { %v761_v44 = vpack.c.bf16 %v638_v42, %v637_v40 }
  0xf9   :  { %v571_v45 = vpop.f32.mrf.mxu2 }
  0xfa   :  { %v572_v46 = vadd.f32 %v2398_v35, %v571_v45  ;;  %881 = vmatmul.bf16.gmra.mxu1 %v761_v44 }
  0xfb   :  { %v494_v49 = vpop.f32.mrf.mxu0 }
  0xfc   :  { %v670_v51 = vmax.f32 %v572_v46, 0.0  ;;  %v495_v53 = vadd.f32 %v2398_v35, %v494_v49  ;;  %v2438_v46 = vld [vmem:[%s2543_s4] ss:$0 sm:$0xff]  ;;  %s2346_s4 = smov [#allocation9]  }
  0xfd   :  { %s1609_s10 = sshll.u32 %s2346_s4, 4  ;;  %s1610_s10 = int_to_ptr.vmem [resolvable:$true] %s1609_s10 }
  0xfe   :  { %533 = vmatmul.bf16.gmra.mxu0 %v1830_v47  ;;  %613 = vmatmul.bf16.gmra.mxu2 %v1846_v48  ;;  %v777_v52 = vpack.c.bf16 %v670_v51, %v669_v50  ;;  %v639_v56 = vmax.f32 %v495_v53, 0.0  ;;  %v1866_v48 = vld [vmem:[#allocation3] sm:$0xff]  }
  0xff   :  { %v1867_v53 = vunpack.c.l.bf16 %v1866_v48 }
 0x100   :  { %961 = vmatmul.bf16.gmra.mxu3 %v777_v52 }
 0x101   :  { %v574_v54 = vpop.f32.mrf.mxu2 }
 0x102   :  { %v575_v59 = vadd.f32 %v2398_v35, %v574_v54  ;;  %v1868_v54 = vunpack.c.h.bf16 %v1866_v48 }
 0x103   :  { %v496_v55 = vpop.f32.mrf.mxu0 }
 0x104   :  { %v497_v57 = vadd.f32 %v2398_v35, %v496_v55  ;;  %v671_v2 = vmax.f32 %v575_v59, 0.0 }
 0x106   :  { %v640_v58 = vmax.f32 %v497_v57, 0.0 }
 0x108   :  { %v762_v60 = vpack.c.bf16 %v640_v58, %v639_v56 }
 0x109   :  { %v576_v61 = vpop.f32.mrf.mxu2 }
 0x10a   :  { %v577_v62 = vadd.f32 %v2398_v35, %v576_v61  ;;  %886 = vmatmul.bf16.gmra.mxu1 %v762_v60 }
 0x10b   :  { %v499_v1 = vpop.f32.mrf.mxu0 }
 0x10c   :  { %v672_v3 = vmax.f32 %v577_v62, 0.0  ;;  %v500_v5 = vadd.f32 %v2398_v35, %v499_v1 }
 0x10e   :  { %538 = vmatmul.bf16.gmra.mxu0 %v1831_v63  ;;  %618 = vmatmul.bf16.gmra.mxu2 %v1847_v0  ;;  %v778_v4 = vpack.c.bf16 %v672_v3, %v671_v2  ;;  %v641_v8 = vmax.f32 %v500_v5, 0.0 }
 0x110   :  { %966 = vmatmul.bf16.gmra.mxu3 %v778_v4  ;;  %v2168_v4 = vld [vmem:[#allocation3 + $0x80] sm:$0xff]  }
 0x111   :  { %v579_v6 = vpop.f32.mrf.mxu2 }
 0x112   :  { %v580_v11 = vadd.f32 %v2398_v35, %v579_v6 }
 0x113   :  { %v501_v7 = vpop.f32.mrf.mxu0 }
 0x114   :  { %v502_v9 = vadd.f32 %v2398_v35, %v501_v7  ;;  %v673_v18 = vmax.f32 %v580_v11, 0.0  ;;  %v2153_v11 = vld [vmem:[#allocation3 + $0x8] sm:$0xff]  }
 0x116   :  { %v642_v10 = vmax.f32 %v502_v9, 0.0 }
 0x118   :  { %v763_v12 = vpack.c.bf16 %v642_v10, %v641_v8  ;;  %v1931_v10 = vunpack.c.l.bf16 %v2168_v4 }
 0x119   :  { %v581_v13 = vpop.f32.mrf.mxu2 }
 0x11a   :  { %v582_v14 = vadd.f32 %v2398_v35, %v581_v13  ;;  %891 = vmatmul.bf16.gmra.mxu1 %v763_v12  ;;  %v1932_v13 = vunpack.c.h.bf16 %v2168_v4 }
 0x11b   :  { %v504_v17 = vpop.f32.mrf.mxu0 }
 0x11c   :  { %v674_v19 = vmax.f32 %v582_v14, 0.0  ;;  %v505_v21 = vadd.f32 %v2398_v35, %v504_v17 }
 0x11e   :  { %543 = vmatmul.bf16.gmra.mxu0 %v1832_v15  ;;  %623 = vmatmul.bf16.gmra.mxu2 %v1848_v16  ;;  %v779_v20 = vpack.c.bf16 %v674_v19, %v673_v18  ;;  %v643_v24 = vmax.f32 %v505_v21, 0.0  ;;  %v1871_v19 = vunpack.c.l.bf16 %v2153_v11 }
 0x120   :  { %971 = vmatmul.bf16.gmra.mxu3 %v779_v20  ;;  %v1872_v20 = vunpack.c.h.bf16 %v2153_v11 }
 0x121   :  { %v584_v22 = vpop.f32.mrf.mxu2 }
 0x122   :  { %v585_v27 = vadd.f32 %v2398_v35, %v584_v22 }
 0x123   :  { %v506_v23 = vpop.f32.mrf.mxu0 }
 0x124   :  { %v507_v25 = vadd.f32 %v2398_v35, %v506_v23  ;;  %v675_v32 = vmax.f32 %v585_v27, 0.0 }
 0x126   :  { %v644_v26 = vmax.f32 %v507_v25, 0.0 }
 0x128   :  { %v764_v28 = vpack.c.bf16 %v644_v26, %v643_v24 }
 0x129   :  { %v586_v29 = vpop.f32.mrf.mxu2 }
 0x12a   :  { %v587_v30 = vadd.f32 %v2398_v35, %v586_v29  ;;  %896 = vmatmul.bf16.gmra.mxu1 %v764_v28 }
 0x12b   :  { %v509_v31 = vpop.f32.mrf.mxu0 }
 0x12c   :  { %v676_v33 = vmax.f32 %v587_v30, 0.0  ;;  %v510_v36 = vadd.f32 %v2398_v35, %v509_v31 }
 0x12e   :  { %v780_v34 = vpack.c.bf16 %v676_v33, %v675_v32  ;;  %v645_v39 = vmax.f32 %v510_v36, 0.0 }
 0x130   :  { %976 = vmatmul.bf16.gmra.mxu3 %v780_v34 }
 0x131   :  { %v589_v37 = vpop.f32.mrf.mxu2 }
 0x132   :  { %v590_v43 = vadd.f32 %v2398_v35, %v589_v37 }
 0x133   :  { %v511_v38 = vpop.f32.mrf.mxu0 }
 0x134   :  { %v512_v40 = vadd.f32 %v2398_v35, %v511_v38  ;;  %v677_v50 = vmax.f32 %v590_v43, 0.0 }
 0x136   :  { %v646_v41 = vmax.f32 %v512_v40, 0.0 }
 0x137   :  { %v862_v42 = vpop.f32.mrf.mxu1 }
 0x138   :  { %v765_v44 = vpack.c.bf16 %v646_v41, %v645_v39  ;;  %v1221_v52 = vadd.f32 %v2438_v46, %v862_v42  ;;  %v2169_v39 = vld [vmem:[#allocation3 + $0x88] sm:$0xff]  }
 0x139   :  { %v591_v45 = vpop.f32.mrf.mxu2 }
 0x13a   :  { %v592_v47 = vadd.f32 %v2398_v35, %v591_v45  ;;  %901 = vmatmul.bf16.gmra.mxu1 %v765_v44  ;;  %v1413_v60 = vadd.f32 %v1867_v53, %v1221_v52  ;;  %v1935_v45 = vunpack.c.l.bf16 %v2169_v39 }
 0x13b   :  { %v514_v49 = vpop.f32.mrf.mxu0 }
 0x13c   :  { %v678_v51 = vmax.f32 %v592_v47, 0.0  ;;  %v515_v57 = vadd.f32 %v2398_v35, %v514_v49  ;;  %v2154_v47 = vld [vmem:[#allocation3 + $0x10] sm:$0xff]   ;;  %v1936_v49 = vunpack.c.h.bf16 %v2169_v39 }
 0x13e   :  { %v781_v55 = vpack.c.bf16 %v678_v51, %v677_v50  ;;  %v647_v0 = vmax.f32 %v515_v57, 0.0 }
 0x13f   :  { %v864_v56 = vpop.f32.mrf.mxu1 }
 0x140   :  { %v1222_v58 = vadd.f32 %v2438_v46, %v864_v56  ;;  %981 = vmatmul.bf16.gmra.mxu3 %v781_v55  ;;  %v1875_v55 = vunpack.c.l.bf16 %v2154_v47  ;;  %v1876_v56 = vunpack.c.h.bf16 %v2154_v47 }
 0x141   :  { %v594_v59 = vpop.f32.mrf.mxu2 }
 0x142   :  { %v1414_v61 = vadd.f32 %v1868_v54, %v1222_v58  ;;  %v595_v6 = vadd.f32 %v2398_v35, %v594_v59 }
 0x143   :  { %v516_v62 = vpop.f32.mrf.mxu0  ;;  %v942_v63 = vpop.f32.mrf.mxu3 }
 0x144   :  { %v1996_v1 = vpack.c.bf16 %v1414_v61, %v1413_v60  ;;  %v517_v2 = vadd.f32 %v2398_v35, %v516_v62  ;;  %v1253_v9 = vadd.f32 %v2438_v46, %v942_v63  ;;  %v679_v16 = vmax.f32 %v595_v6, 0.0 }
 0x146   :  { %1997 = vst [vmem:[#allocation9] sm:$0xff] %v1996_v1   ;;  %v648_v3 = vmax.f32 %v517_v2, 0.0  ;;  %v1445_v21 = vadd.f32 %v1931_v10, %v1253_v9  ;;  %v2170_v10 = vld [vmem:[#allocation3 + $0x90] sm:$0xff]  }
 0x147   :  { %v867_v5 = vpop.f32.mrf.mxu1 }
 0x148   :  { %v766_v7 = vpack.c.bf16 %v648_v3, %v647_v0  ;;  %v1223_v22 = vadd.f32 %v2438_v46, %v867_v5 }
 0x149   :  { %v596_v8 = vpop.f32.mrf.mxu2 }
 0x14a   :  { %v597_v12 = vadd.f32 %v2398_v35, %v596_v8  ;;  %906 = vmatmul.bf16.gmra.mxu1 %v766_v7  ;;  %v1415_v30 = vadd.f32 %v1871_v19, %v1223_v22  ;;  %v1940_v19 = vunpack.c.h.bf16 %v2170_v10 }
 0x14b   :  { %v519_v14 = vpop.f32.mrf.mxu0  ;;  %v944_v15 = vpop.f32.mrf.mxu3 }
 0x14c   :  { %v680_v17 = vmax.f32 %v597_v12, 0.0  ;;  %v1254_v18 = vadd.f32 %v2438_v46, %v944_v15  ;;  %v520_v26 = vadd.f32 %v2398_v35, %v519_v14 }
 0x14e   :  { %v1446_v23 = vadd.f32 %v1932_v13, %v1254_v18  ;;  %v782_v24 = vpack.c.bf16 %v680_v17, %v679_v16  ;;  %v649_v34 = vmax.f32 %v520_v26, 0.0  ;;  %v1939_v16 = vunpack.c.l.bf16 %v2170_v10  ;;  %v2155_v17 = vld [vmem:[#allocation3 + $0x18] sm:$0xff]  }
 0x14f   :  { %v869_v25 = vpop.f32.mrf.mxu1  ;;  %v1880_v26 = vunpack.c.h.bf16 %v2155_v17 }
 0x150   :  { %v2076_v27 = vpack.c.bf16 %v1446_v23, %v1445_v21  ;;  %v1224_v28 = vadd.f32 %v2438_v46, %v869_v25  ;;  %986 = vmatmul.bf16.gmra.mxu3 %v782_v24  ;;  %v1879_v25 = vunpack.c.l.bf16 %v2155_v17 }
 0x151   :  { %v599_v29 = vpop.f32.mrf.mxu2 }
 0x152   :  { %2199 = vst [vmem:[#allocation9 + $0x80] sm:$0xff] %v2076_v27   ;;  %v1416_v31 = vadd.f32 %v1872_v20, %v1224_v28  ;;  %v600_v41 = vadd.f32 %v2398_v35, %v599_v29 }
 0x153   :  { %v521_v32 = vpop.f32.mrf.mxu0  ;;  %v947_v33 = vpop.f32.mrf.mxu3 }
 0x154   :  { %v2001_v36 = vpack.c.bf16 %v1416_v31, %v1415_v30  ;;  %v522_v37 = vadd.f32 %v2398_v35, %v521_v32  ;;  %v1255_v44 = vadd.f32 %v2438_v46, %v947_v33  ;;  %v681_v52 = vmax.f32 %v600_v41, 0.0 }
 0x156   :  { %2184 = vst [vmem:[#allocation9 + $0x8] sm:$0xff] %v2001_v36   ;;  %v650_v38 = vmax.f32 %v522_v37, 0.0  ;;  %v1447_v57 = vadd.f32 %v1935_v45, %v1255_v44  ;;  %v2171_v45 = vld [vmem:[#allocation3 + $0x98] sm:$0xff]  }
 0x157   :  { %v872_v40 = vpop.f32.mrf.mxu1 }
 0x158   :  { %v767_v42 = vpack.c.bf16 %v650_v38, %v649_v34  ;;  %v1225_v58 = vadd.f32 %v2438_v46, %v872_v40 }
 0x159   :  { %v601_v43 = vpop.f32.mrf.mxu2 }
 0x15a   :  { %v602_v48 = vadd.f32 %v2398_v35, %v601_v43  ;;  %911 = vmatmul.bf16.gmra.mxu1 %v767_v42  ;;  %v1417_v2 = vadd.f32 %v1875_v55, %v1225_v58  ;;  %v1944_v55 = vunpack.c.h.bf16 %v2171_v45 }
 0x15b   :  { %v524_v50 = vpop.f32.mrf.mxu0  ;;  %v949_v51 = vpop.f32.mrf.mxu3 }
 0x15c   :  { %v682_v53 = vmax.f32 %v602_v48, 0.0  ;;  %v1256_v54 = vadd.f32 %v2438_v46, %v949_v51  ;;  %v525_v62 = vadd.f32 %v2398_v35, %v524_v50 }
 0x15e   :  { %v1448_v59 = vadd.f32 %v1936_v49, %v1256_v54  ;;  %v783_v60 = vpack.c.bf16 %v682_v53, %v681_v52  ;;  %v651_v6 = vmax.f32 %v525_v62, 0.0  ;;  %v1943_v52 = vunpack.c.l.bf16 %v2171_v45  ;;  %v2156_v53 = vld [vmem:[#allocation3 + $0x20] sm:$0xff]  }
 0x15f   :  { %v874_v61 = vpop.f32.mrf.mxu1  ;;  %v1884_v62 = vunpack.c.h.bf16 %v2156_v53 }
 0x160   :  { %v2081_v63 = vpack.c.bf16 %v1448_v59, %v1447_v57  ;;  %v1226_v0 = vadd.f32 %v2438_v46, %v874_v61  ;;  %991 = vmatmul.bf16.gmra.mxu3 %v783_v60  ;;  %v1883_v61 = vunpack.c.l.bf16 %v2156_v53 }
 0x161   :  { %v604_v1 = vpop.f32.mrf.mxu2 }
 0x162   :  { %2200 = vst [vmem:[#allocation9 + $0x88] sm:$0xff] %v2081_v63   ;;  %v1418_v3 = vadd.f32 %v1876_v56, %v1226_v0  ;;  %v605_v12 = vadd.f32 %v2398_v35, %v604_v1 }
 0x163   :  { %v526_v4 = vpop.f32.mrf.mxu0  ;;  %v952_v5 = vpop.f32.mrf.mxu3 }
 0x164   :  { %v2006_v7 = vpack.c.bf16 %v1418_v3, %v1417_v2  ;;  %v527_v8 = vadd.f32 %v2398_v35, %v526_v4  ;;  %v1257_v15 = vadd.f32 %v2438_v46, %v952_v5  ;;  %v683_v22 = vmax.f32 %v605_v12, 0.0 }
 0x166   :  { %2185 = vst [vmem:[#allocation9 + $0x10] sm:$0xff] %v2006_v7   ;;  %v652_v9 = vmax.f32 %v527_v8, 0.0  ;;  %v1449_v27 = vadd.f32 %v1939_v16, %v1257_v15  ;;  %v2172_v16 = vld [vmem:[#allocation3 + $0xa0] sm:$0xff]  }
 0x167   :  { %v877_v11 = vpop.f32.mrf.mxu1 }
 0x168   :  { %v768_v13 = vpack.c.bf16 %v652_v9, %v651_v6  ;;  %v1227_v28 = vadd.f32 %v2438_v46, %v877_v11 }
 0x169   :  { %v606_v14 = vpop.f32.mrf.mxu2 }
 0x16a   :  { %v607_v18 = vadd.f32 %v2398_v35, %v606_v14  ;;  %916 = vmatmul.bf16.gmra.mxu1 %v768_v13  ;;  %v1419_v37 = vadd.f32 %v1879_v25, %v1227_v28  ;;  %v1948_v25 = vunpack.c.h.bf16 %v2172_v16 }
 0x16b   :  { %v529_v20 = vpop.f32.mrf.mxu0  ;;  %v954_v21 = vpop.f32.mrf.mxu3 }
 0x16c   :  { %v684_v23 = vmax.f32 %v607_v18, 0.0  ;;  %v1258_v24 = vadd.f32 %v2438_v46, %v954_v21  ;;  %v530_v32 = vadd.f32 %v2398_v35, %v529_v20 }
 0x16e   :  { %v1450_v29 = vadd.f32 %v1940_v19, %v1258_v24  ;;  %v784_v30 = vpack.c.bf16 %v684_v23, %v683_v22  ;;  %v653_v41 = vmax.f32 %v530_v32, 0.0  ;;  %v1947_v22 = vunpack.c.l.bf16 %v2172_v16  ;;  %v2157_v23 = vld [vmem:[#allocation3 + $0x28] sm:$0xff]  }
 0x16f   :  { %v879_v31 = vpop.f32.mrf.mxu1  ;;  %v1888_v32 = vunpack.c.h.bf16 %v2157_v23 }
 0x170   :  { %v2086_v33 = vpack.c.bf16 %v1450_v29, %v1449_v27  ;;  %v1228_v34 = vadd.f32 %v2438_v46, %v879_v31  ;;  %996 = vmatmul.bf16.gmra.mxu3 %v784_v30  ;;  %v1887_v31 = vunpack.c.l.bf16 %v2157_v23 }
 0x171   :  { %v609_v36 = vpop.f32.mrf.mxu2 }
 0x172   :  { %2201 = vst [vmem:[#allocation9 + $0x90] sm:$0xff] %v2086_v33   ;;  %v1420_v38 = vadd.f32 %v1880_v26, %v1228_v34  ;;  %v610_v48 = vadd.f32 %v2398_v35, %v609_v36 }
 0x173   :  { %v531_v39 = vpop.f32.mrf.mxu0  ;;  %v957_v40 = vpop.f32.mrf.mxu3 }
 0x174   :  { %v2011_v42 = vpack.c.bf16 %v1420_v38, %v1419_v37  ;;  %v532_v43 = vadd.f32 %v2398_v35, %v531_v39  ;;  %v1259_v51 = vadd.f32 %v2438_v46, %v957_v40  ;;  %v685_v58 = vmax.f32 %v610_v48, 0.0 }
 0x176   :  { %2186 = vst [vmem:[#allocation9 + $0x18] sm:$0xff] %v2011_v42   ;;  %v654_v44 = vmax.f32 %v532_v43, 0.0  ;;  %v1451_v63 = vadd.f32 %v1943_v52, %v1259_v51  ;;  %v2173_v52 = vld [vmem:[#allocation3 + $0xa8] sm:$0xff]  }
 0x177   :  { %v882_v47 = vpop.f32.mrf.mxu1 }
 0x178   :  { %v769_v49 = vpack.c.bf16 %v654_v44, %v653_v41  ;;  %v1229_v0 = vadd.f32 %v2438_v46, %v882_v47 }
 0x179   :  { %v611_v50 = vpop.f32.mrf.mxu2 }
 0x17a   :  { %v612_v54 = vadd.f32 %v2398_v35, %v611_v50  ;;  %921 = vmatmul.bf16.gmra.mxu1 %v769_v49  ;;  %v1421_v8 = vadd.f32 %v1883_v61, %v1229_v0  ;;  %v1952_v61 = vunpack.c.h.bf16 %v2173_v52 }
 0x17b   :  { %v534_v56 = vpop.f32.mrf.mxu0  ;;  %v959_v57 = vpop.f32.mrf.mxu3 }
 0x17c   :  { %v686_v59 = vmax.f32 %v612_v54, 0.0  ;;  %v1260_v60 = vadd.f32 %v2438_v46, %v959_v57  ;;  %v535_v4 = vadd.f32 %v2398_v35, %v534_v56 }
 0x17e   :  { %v785_v1 = vpack.c.bf16 %v686_v59, %v685_v58  ;;  %v1452_v2 = vadd.f32 %v1944_v55, %v1260_v60  ;;  %v655_v12 = vmax.f32 %v535_v4, 0.0  ;;  %v1951_v58 = vunpack.c.l.bf16 %v2173_v52  ;;  %v2158_v59 = vld [vmem:[#allocation3 + $0x30] sm:$0xff]  }
 0x17f   :  { %v884_v3 = vpop.f32.mrf.mxu1  ;;  %v1892_v4 = vunpack.c.h.bf16 %v2158_v59 }
 0x180   :  { %v2091_v5 = vpack.c.bf16 %v1452_v2, %v1451_v63  ;;  %v1230_v6 = vadd.f32 %v2438_v46, %v884_v3  ;;  %1001 = vmatmul.bf16.gmra.mxu3 %v785_v1  ;;  %v1891_v3 = vunpack.c.l.bf16 %v2158_v59 }
 0x181   :  { %v614_v7 = vpop.f32.mrf.mxu2 }
 0x182   :  { %2202 = vst [vmem:[#allocation9 + $0x98] sm:$0xff] %v2091_v5   ;;  %v1422_v9 = vadd.f32 %v1884_v62, %v1230_v6  ;;  %v615_v18 = vadd.f32 %v2398_v35, %v614_v7 }
 0x183   :  { %v536_v10 = vpop.f32.mrf.mxu0  ;;  %v962_v11 = vpop.f32.mrf.mxu3 }
 0x184   :  { %v2016_v13 = vpack.c.bf16 %v1422_v9, %v1421_v8  ;;  %v537_v14 = vadd.f32 %v2398_v35, %v536_v10  ;;  %v1261_v21 = vadd.f32 %v2438_v46, %v962_v11  ;;  %v687_v28 = vmax.f32 %v615_v18, 0.0 }
 0x186   :  { %2187 = vst [vmem:[#allocation9 + $0x20] sm:$0xff] %v2016_v13   ;;  %v656_v15 = vmax.f32 %v537_v14, 0.0  ;;  %v1453_v33 = vadd.f32 %v1947_v22, %v1261_v21  ;;  %v2174_v22 = vld [vmem:[#allocation3 + $0xb0] sm:$0xff]  }
 0x187   :  { %v887_v17 = vpop.f32.mrf.mxu1 }
 0x188   :  { %v770_v19 = vpack.c.bf16 %v656_v15, %v655_v12  ;;  %v1231_v34 = vadd.f32 %v2438_v46, %v887_v17 }
 0x189   :  { %v616_v20 = vpop.f32.mrf.mxu2 }
 0x18a   :  { %v617_v24 = vadd.f32 %v2398_v35, %v616_v20  ;;  %926 = vmatmul.bf16.gmra.mxu1 %v770_v19  ;;  %v1423_v43 = vadd.f32 %v1887_v31, %v1231_v34  ;;  %v1956_v31 = vunpack.c.h.bf16 %v2174_v22 }
 0x18b   :  { %v539_v26 = vpop.f32.mrf.mxu0  ;;  %v964_v27 = vpop.f32.mrf.mxu3 }
 0x18c   :  { %v688_v29 = vmax.f32 %v617_v24, 0.0  ;;  %v1262_v30 = vadd.f32 %v2438_v46, %v964_v27  ;;  %v540_v39 = vadd.f32 %v2398_v35, %v539_v26 }
 0x18e   :  { %v786_v36 = vpack.c.bf16 %v688_v29, %v687_v28  ;;  %v1454_v37 = vadd.f32 %v1948_v25, %v1262_v30  ;;  %v657_v48 = vmax.f32 %v540_v39, 0.0  ;;  %v1955_v28 = vunpack.c.l.bf16 %v2174_v22  ;;  %v2159_v29 = vld [vmem:[#allocation3 + $0x38] sm:$0xff]  }
 0x18f   :  { %v889_v38 = vpop.f32.mrf.mxu1 }
 0x190   :  { %v2096_v40 = vpack.c.bf16 %v1454_v37, %v1453_v33  ;;  %v1232_v41 = vadd.f32 %v2438_v46, %v889_v38  ;;  %1006 = vmatmul.bf16.gmra.mxu3 %v786_v36  ;;  %v1895_v37 = vunpack.c.l.bf16 %v2159_v29  ;;  %v1896_v38 = vunpack.c.h.bf16 %v2159_v29 }
 0x191   :  { %v619_v42 = vpop.f32.mrf.mxu2 }
 0x192   :  { %2203 = vst [vmem:[#allocation9 + $0xa0] sm:$0xff] %v2096_v40   ;;  %v1424_v44 = vadd.f32 %v1888_v32, %v1232_v41  ;;  %v620_v54 = vadd.f32 %v2398_v35, %v619_v42 }
 0x193   :  { %v541_v45 = vpop.f32.mrf.mxu0  ;;  %v967_v47 = vpop.f32.mrf.mxu3 }
 0x194   :  { %v2021_v49 = vpack.c.bf16 %v1424_v44, %v1423_v43  ;;  %v542_v50 = vadd.f32 %v2398_v35, %v541_v45  ;;  %v1263_v57 = vadd.f32 %v2438_v46, %v967_v47  ;;  %v689_v0 = vmax.f32 %v620_v54, 0.0  ;;  %v2160_v54 = vld [vmem:[#allocation3 + $0x40] sm:$0xff]  }
 0x196   :  { %2188 = vst [vmem:[#allocation9 + $0x28] sm:$0xff] %v2021_v49   ;;  %v658_v51 = vmax.f32 %v542_v50, 0.0  ;;  %v1455_v5 = vadd.f32 %v1951_v58, %v1263_v57  ;;  %v2175_v50 = vld [vmem:[#allocation3 + $0xb8] sm:$0xff]   ;;  %v1899_v58 = vunpack.c.l.bf16 %v2160_v54 }
 0x197   :  { %v892_v53 = vpop.f32.mrf.mxu1 }
 0x198   :  { %v771_v55 = vpack.c.bf16 %v658_v51, %v657_v48  ;;  %v1233_v6 = vadd.f32 %v2438_v46, %v892_v53  ;;  %v1959_v53 = vunpack.c.l.bf16 %v2175_v50 }
 0x199   :  { %v621_v56 = vpop.f32.mrf.mxu2 }
 0x19a   :  { %v622_v60 = vadd.f32 %v2398_v35, %v621_v56  ;;  %931 = vmatmul.bf16.gmra.mxu1 %v771_v55  ;;  %v1425_v14 = vadd.f32 %v1891_v3, %v1233_v6  ;;  %v1960_v55 = vunpack.c.h.bf16 %v2175_v50  ;;  %v2176_v6 = vld [vmem:[#allocation3 + $0xc0] sm:$0xff]  }
 0x19b   :  { %v544_v62 = vpop.f32.mrf.mxu0  ;;  %v969_v63 = vpop.f32.mrf.mxu3 }
 0x19c   :  { %v690_v1 = vmax.f32 %v622_v60, 0.0  ;;  %v1264_v2 = vadd.f32 %v2438_v46, %v969_v63  ;;  %v545_v10 = vadd.f32 %v2398_v35, %v544_v62  ;;  %v1900_v62 = vunpack.c.h.bf16 %v2160_v54 }
 0x19e   :  { %v787_v7 = vpack.c.bf16 %v690_v1, %v689_v0  ;;  %v1456_v8 = vadd.f32 %v1952_v61, %v1264_v2  ;;  %v659_v18 = vmax.f32 %v545_v10, 0.0  ;;  %v2161_v10 = vld [vmem:[#allocation3 + $0x48] sm:$0xff]  }
 0x19f   :  { %v894_v9 = vpop.f32.mrf.mxu1 }
 0x1a0   :  { %v2101_v11 = vpack.c.bf16 %v1456_v8, %v1455_v5  ;;  %v1234_v12 = vadd.f32 %v2438_v46, %v894_v9  ;;  %1011 = vmatmul.bf16.gmra.mxu3 %v787_v7  ;;  %v1963_v9 = vunpack.c.l.bf16 %v2176_v6 }
 0x1a1   :  { %v624_v13 = vpop.f32.mrf.mxu2 }
 0x1a2   :  { %2204 = vst [vmem:[#allocation9 + $0xa8] sm:$0xff] %v2101_v11   ;;  %v1426_v15 = vadd.f32 %v1892_v4, %v1234_v12  ;;  %v625_v24 = vadd.f32 %v2398_v35, %v624_v13  ;;  %v1964_v11 = vunpack.c.h.bf16 %v2176_v6 }
 0x1a3   :  { %v546_v16 = vpop.f32.mrf.mxu0  ;;  %v972_v17 = vpop.f32.mrf.mxu3 }
 0x1a4   :  { %v2026_v19 = vpack.c.bf16 %v1426_v15, %v1425_v14  ;;  %v547_v20 = vadd.f32 %v2398_v35, %v546_v16  ;;  %v1265_v27 = vadd.f32 %v2438_v46, %v972_v17  ;;  %v691_v33 = vmax.f32 %v625_v24, 0.0 }
 0x1a5   :  { %v1903_v14 = vunpack.c.l.bf16 %v2161_v10 }
 0x1a6   :  { %2189 = vst [vmem:[#allocation9 + $0x30] sm:$0xff] %v2026_v19   ;;  %v660_v21 = vmax.f32 %v547_v20, 0.0  ;;  %v1457_v39 = vadd.f32 %v1955_v28, %v1265_v27 }
 0x1a7   :  { %v897_v23 = vpop.f32.mrf.mxu1 }
 0x1a8   :  { %v772_v25 = vpack.c.bf16 %v660_v21, %v659_v18  ;;  %v1235_v40 = vadd.f32 %v2438_v46, %v897_v23  ;;  %v1904_v18 = vunpack.c.h.bf16 %v2161_v10 }
 0x1a9   :  { %v626_v26 = vpop.f32.mrf.mxu2 }
 0x1aa   :  { %v627_v30 = vadd.f32 %v2398_v35, %v626_v26  ;;  %936 = vmatmul.bf16.gmra.mxu1 %v772_v25  ;;  %v1427_v35 = vadd.f32 %v1895_v37, %v1235_v40  ;;  %v2177_v26 = vld [vmem:[#allocation3 + $0xc8] sm:$0xff]  }
 0x1ab   :  { %v974_v32 = vpop.f32.mrf.mxu3  ;;  %v1967_v29 = vunpack.c.l.bf16 %v2177_v26 }
 0x1ac   :  { %v692_v34 = vmax.f32 %v627_v30, 0.0  ;;  %v1266_v36 = vadd.f32 %v2438_v46, %v974_v32  ;;  %v2162_v30 = vld [vmem:[#allocation3 + $0x50] sm:$0xff]  }
 0x1ae   :  { %v788_v41 = vpack.c.bf16 %v692_v34, %v691_v33  ;;  %v1458_v42 = vadd.f32 %v1956_v31, %v1266_v36  ;;  %v1968_v31 = vunpack.c.h.bf16 %v2177_v26  ;;  %v1907_v34 = vunpack.c.l.bf16 %v2162_v30 }
 0x1af   :  { %v899_v43 = vpop.f32.mrf.mxu1 }
 0x1b0   :  { %v2106_v44 = vpack.c.bf16 %v1458_v42, %v1457_v39  ;;  %v1236_v45 = vadd.f32 %v2438_v46, %v899_v43  ;;  %1016 = vmatmul.bf16.gmra.mxu3 %v788_v41  ;;  %v1908_v39 = vunpack.c.h.bf16 %v2162_v30 }
 0x1b2   :  { %2205 = vst [vmem:[#allocation9 + $0xb0] sm:$0xff] %v2106_v44   ;;  %v1428_v47 = vadd.f32 %v1896_v38, %v1236_v45 }
 0x1b3   :  { %v977_v48 = vpop.f32.mrf.mxu3 }
 0x1b4   :  { %v2031_v49 = vpack.c.bf16 %v1428_v47, %v1427_v35  ;;  %v1267_v52 = vadd.f32 %v2438_v46, %v977_v48  ;;  %v2178_v47 = vld [vmem:[#allocation3 + $0xd0] sm:$0xff]  }
 0x1b5   :  { %v1971_v50 = vunpack.c.l.bf16 %v2178_v47 }
 0x1b6   :  { %2190 = vst [vmem:[#allocation9 + $0x38] sm:$0xff] %v2031_v49   ;;  %v1459_v59 = vadd.f32 %v1959_v53, %v1267_v52  ;;  %v1972_v52 = vunpack.c.h.bf16 %v2178_v47 }
 0x1b7   :  { %v902_v51 = vpop.f32.mrf.mxu1 }
 0x1b8   :  { %v1237_v60 = vadd.f32 %v2438_v46, %v902_v51  ;;  %v2163_v51 = vld [vmem:[#allocation3 + $0x58] sm:$0xff]  }
 0x1ba   :  { %v1429_v2 = vadd.f32 %v1899_v58, %v1237_v60 }
 0x1bb   :  { %v979_v56 = vpop.f32.mrf.mxu3 }
 0x1bc   :  { %v1268_v57 = vadd.f32 %v2438_v46, %v979_v56 }
 0x1be   :  { %v1460_v61 = vadd.f32 %v1960_v55, %v1268_v57  ;;  %v1911_v55 = vunpack.c.l.bf16 %v2163_v51 }
 0x1bf   :  { %v904_v63 = vpop.f32.mrf.mxu1 }
 0x1c0   :  { %v2111_v0 = vpack.c.bf16 %v1460_v61, %v1459_v59  ;;  %v1238_v1 = vadd.f32 %v2438_v46, %v904_v63  ;;  %v1912_v59 = vunpack.c.h.bf16 %v2163_v51 }
 0x1c2   :  { %2206 = vst [vmem:[#allocation9 + $0xb8] sm:$0xff] %v2111_v0   ;;  %v1430_v3 = vadd.f32 %v1900_v62, %v1238_v1 }
 0x1c3   :  { %v982_v4 = vpop.f32.mrf.mxu3 }
 0x1c4   :  { %v2036_v5 = vpack.c.bf16 %v1430_v3, %v1429_v2  ;;  %v1269_v8 = vadd.f32 %v2438_v46, %v982_v4  ;;  %v2179_v3 = vld [vmem:[#allocation3 + $0xd8] sm:$0xff]  }
 0x1c5   :  { %v1975_v6 = vunpack.c.l.bf16 %v2179_v3 }
 0x1c6   :  { %2191 = vst [vmem:[#allocation9 + $0x40] sm:$0xff] %v2036_v5   ;;  %v1461_v15 = vadd.f32 %v1963_v9, %v1269_v8  ;;  %v1976_v8 = vunpack.c.h.bf16 %v2179_v3 }
 0x1c7   :  { %v907_v7 = vpop.f32.mrf.mxu1 }
 0x1c8   :  { %v1239_v16 = vadd.f32 %v2438_v46, %v907_v7  ;;  %v2164_v7 = vld [vmem:[#allocation3 + $0x60] sm:$0xff]  }
 0x1ca   :  { %v1431_v22 = vadd.f32 %v1903_v14, %v1239_v16 }
 0x1cb   :  { %v984_v12 = vpop.f32.mrf.mxu3 }
 0x1cc   :  { %v1270_v13 = vadd.f32 %v2438_v46, %v984_v12 }
 0x1ce   :  { %v1462_v17 = vadd.f32 %v1964_v11, %v1270_v13  ;;  %v1915_v11 = vunpack.c.l.bf16 %v2164_v7 }
 0x1cf   :  { %v909_v19 = vpop.f32.mrf.mxu1 }
 0x1d0   :  { %v2116_v20 = vpack.c.bf16 %v1462_v17, %v1461_v15  ;;  %v1240_v21 = vadd.f32 %v2438_v46, %v909_v19  ;;  %v1916_v15 = vunpack.c.h.bf16 %v2164_v7 }
 0x1d2   :  { %2207 = vst [vmem:[#allocation9 + $0xc0] sm:$0xff] %v2116_v20   ;;  %v1432_v23 = vadd.f32 %v1904_v18, %v1240_v21 }
 0x1d3   :  { %v987_v24 = vpop.f32.mrf.mxu3 }
 0x1d4   :  { %v2041_v25 = vpack.c.bf16 %v1432_v23, %v1431_v22  ;;  %v1271_v28 = vadd.f32 %v2438_v46, %v987_v24  ;;  %v2180_v23 = vld [vmem:[#allocation3 + $0xe0] sm:$0xff]  }
 0x1d5   :  { %v1979_v26 = vunpack.c.l.bf16 %v2180_v23 }
 0x1d6   :  { %2192 = vst [vmem:[#allocation9 + $0x48] sm:$0xff] %v2041_v25   ;;  %v1463_v36 = vadd.f32 %v1967_v29, %v1271_v28  ;;  %v1980_v28 = vunpack.c.h.bf16 %v2180_v23 }
 0x1d7   :  { %v912_v27 = vpop.f32.mrf.mxu1 }
 0x1d8   :  { %v1241_v37 = vadd.f32 %v2438_v46, %v912_v27  ;;  %v2165_v27 = vld [vmem:[#allocation3 + $0x68] sm:$0xff]  }
 0x1da   :  { %v1433_v43 = vadd.f32 %v1907_v34, %v1241_v37 }
 0x1db   :  { %v989_v32 = vpop.f32.mrf.mxu3 }
 0x1dc   :  { %v1272_v33 = vadd.f32 %v2438_v46, %v989_v32 }
 0x1de   :  { %v1464_v38 = vadd.f32 %v1968_v31, %v1272_v33  ;;  %v1919_v31 = vunpack.c.l.bf16 %v2165_v27 }
 0x1df   :  { %v914_v40 = vpop.f32.mrf.mxu1 }
 0x1e0   :  { %v2121_v41 = vpack.c.bf16 %v1464_v38, %v1463_v36  ;;  %v1242_v42 = vadd.f32 %v2438_v46, %v914_v40  ;;  %v1920_v36 = vunpack.c.h.bf16 %v2165_v27 }
 0x1e2   :  { %2208 = vst [vmem:[#allocation9 + $0xc8] sm:$0xff] %v2121_v41   ;;  %v1434_v44 = vadd.f32 %v1908_v39, %v1242_v42 }
 0x1e3   :  { %v992_v45 = vpop.f32.mrf.mxu3 }
 0x1e4   :  { %v2046_v35 = vpack.c.bf16 %v1434_v44, %v1433_v43  ;;  %v1273_v49 = vadd.f32 %v2438_v46, %v992_v45  ;;  %v2181_v44 = vld [vmem:[#allocation3 + $0xe8] sm:$0xff]  }
 0x1e5   :  { %v1983_v47 = vunpack.c.l.bf16 %v2181_v44 }
 0x1e6   :  { %2193 = vst [vmem:[#allocation9 + $0x50] sm:$0xff] %v2046_v35   ;;  %v1465_v56 = vadd.f32 %v1971_v50, %v1273_v49  ;;  %v1984_v49 = vunpack.c.h.bf16 %v2181_v44 }
 0x1e7   :  { %v917_v48 = vpop.f32.mrf.mxu1 }
 0x1e8   :  { %v1243_v57 = vadd.f32 %v2438_v46, %v917_v48  ;;  %v2166_v48 = vld [vmem:[#allocation3 + $0x70] sm:$0xff]  }
 0x1ea   :  { %v1435_v63 = vadd.f32 %v1911_v55, %v1243_v57 }
 0x1eb   :  { %v994_v53 = vpop.f32.mrf.mxu3 }
 0x1ec   :  { %v1274_v54 = vadd.f32 %v2438_v46, %v994_v53 }
 0x1ee   :  { %v1466_v58 = vadd.f32 %v1972_v52, %v1274_v54  ;;  %v1923_v52 = vunpack.c.l.bf16 %v2166_v48 }
 0x1ef   :  { %v919_v60 = vpop.f32.mrf.mxu1 }
 0x1f0   :  { %v2126_v61 = vpack.c.bf16 %v1466_v58, %v1465_v56  ;;  %v1244_v62 = vadd.f32 %v2438_v46, %v919_v60  ;;  %v1924_v56 = vunpack.c.h.bf16 %v2166_v48 }
 0x1f2   :  { %2209 = vst [vmem:[#allocation9 + $0xd0] sm:$0xff] %v2126_v61   ;;  %v1436_v0 = vadd.f32 %v1912_v59, %v1244_v62 }
 0x1f3   :  { %v997_v1 = vpop.f32.mrf.mxu3 }
 0x1f4   :  { %v2051_v2 = vpack.c.bf16 %v1436_v0, %v1435_v63  ;;  %v1275_v5 = vadd.f32 %v2438_v46, %v997_v1  ;;  %v2182_v0 = vld [vmem:[#allocation3 + $0xf0] sm:$0xff]  }
 0x1f5   :  { %v1987_v3 = vunpack.c.l.bf16 %v2182_v0 }
 0x1f6   :  { %2194 = vst [vmem:[#allocation9 + $0x58] sm:$0xff] %v2051_v2   ;;  %v1467_v12 = vadd.f32 %v1975_v6, %v1275_v5  ;;  %v1988_v5 = vunpack.c.h.bf16 %v2182_v0 }
 0x1f7   :  { %v922_v4 = vpop.f32.mrf.mxu1 }
 0x1f8   :  { %v1245_v13 = vadd.f32 %v2438_v46, %v922_v4  ;;  %v2167_v4 = vld [vmem:[#allocation3 + $0x78] sm:$0xff]  }
 0x1fa   :  { %v1437_v19 = vadd.f32 %v1915_v11, %v1245_v13 }
 0x1fb   :  { %v999_v9 = vpop.f32.mrf.mxu3 }
 0x1fc   :  { %v1276_v10 = vadd.f32 %v2438_v46, %v999_v9 }
 0x1fe   :  { %v1468_v14 = vadd.f32 %v1976_v8, %v1276_v10  ;;  %v1927_v8 = vunpack.c.l.bf16 %v2167_v4 }
 0x1ff   :  { %v924_v16 = vpop.f32.mrf.mxu1 }
 0x200   :  { %v2131_v17 = vpack.c.bf16 %v1468_v14, %v1467_v12  ;;  %v1246_v18 = vadd.f32 %v2438_v46, %v924_v16  ;;  %v1928_v12 = vunpack.c.h.bf16 %v2167_v4 }
 0x202   :  { %2210 = vst [vmem:[#allocation9 + $0xd8] sm:$0xff] %v2131_v17   ;;  %v1438_v20 = vadd.f32 %v1916_v15, %v1246_v18 }
 0x203   :  { %v1002_v21 = vpop.f32.mrf.mxu3 }
 0x204   :  { %v2056_v22 = vpack.c.bf16 %v1438_v20, %v1437_v19  ;;  %v1277_v25 = vadd.f32 %v2438_v46, %v1002_v21  ;;  %v2183_v20 = vld [vmem:[#allocation3 + $0xf8] sm:$0xff]  }
 0x205   :  { %v1992_v23 = vunpack.c.h.bf16 %v2183_v20 }
 0x206   :  { %2195 = vst [vmem:[#allocation9 + $0x60] sm:$0xff] %v2056_v22   ;;  %v1469_v32 = vadd.f32 %v1979_v26, %v1277_v25  ;;  %v1991_v22 = vunpack.c.l.bf16 %v2183_v20 }
 0x207   :  { %v927_v24 = vpop.f32.mrf.mxu1 }
 0x208   :  { %v1247_v33 = vadd.f32 %v2438_v46, %v927_v24 }
 0x20a   :  { %v1439_v40 = vadd.f32 %v1919_v31, %v1247_v33 }
 0x20b   :  { %v1004_v29 = vpop.f32.mrf.mxu3 }
 0x20c   :  { %v1278_v30 = vadd.f32 %v2438_v46, %v1004_v29 }
 0x20e   :  { %v1470_v34 = vadd.f32 %v1980_v28, %v1278_v30 }
 0x20f   :  { %v929_v37 = vpop.f32.mrf.mxu1 }
 0x210   :  { %v2136_v38 = vpack.c.bf16 %v1470_v34, %v1469_v32  ;;  %v1248_v39 = vadd.f32 %v2438_v46, %v929_v37 }
 0x212   :  { %2211 = vst [vmem:[#allocation9 + $0xe0] sm:$0xff] %v2136_v38   ;;  %v1440_v41 = vadd.f32 %v1920_v36, %v1248_v39 }
 0x213   :  { %v1007_v42 = vpop.f32.mrf.mxu3 }
 0x214   :  { %v2061_v43 = vpack.c.bf16 %v1440_v41, %v1439_v40  ;;  %v1279_v35 = vadd.f32 %v2438_v46, %v1007_v42 }
 0x216   :  { %2196 = vst [vmem:[#allocation9 + $0x68] sm:$0xff] %v2061_v43   ;;  %v1471_v53 = vadd.f32 %v1983_v47, %v1279_v35 }
 0x217   :  { %v932_v45 = vpop.f32.mrf.mxu1 }
 0x218   :  { %v1249_v54 = vadd.f32 %v2438_v46, %v932_v45 }
 0x21a   :  { %v1441_v60 = vadd.f32 %v1923_v52, %v1249_v54 }
 0x21b   :  { %v1009_v50 = vpop.f32.mrf.mxu3 }
 0x21c   :  { %v1280_v51 = vadd.f32 %v2438_v46, %v1009_v50 }
 0x21e   :  { %v1472_v55 = vadd.f32 %v1984_v49, %v1280_v51 }
 0x21f   :  { %v934_v57 = vpop.f32.mrf.mxu1 }
 0x220   :  { %v2141_v58 = vpack.c.bf16 %v1472_v55, %v1471_v53  ;;  %v1250_v59 = vadd.f32 %v2438_v46, %v934_v57 }
 0x222   :  { %2212 = vst [vmem:[#allocation9 + $0xe8] sm:$0xff] %v2141_v58   ;;  %v1442_v61 = vadd.f32 %v1924_v56, %v1250_v59 }
 0x223   :  { %v1012_v62 = vpop.f32.mrf.mxu3 }
 0x224   :  { %v2066_v63 = vpack.c.bf16 %v1442_v61, %v1441_v60  ;;  %v1281_v2 = vadd.f32 %v2438_v46, %v1012_v62 }
 0x226   :  { %2197 = vst [vmem:[#allocation9 + $0x70] sm:$0xff] %v2066_v63   ;;  %v1473_v9 = vadd.f32 %v1987_v3, %v1281_v2 }
 0x227   :  { %v937_v1 = vpop.f32.mrf.mxu1 }
 0x228   :  { %v1251_v10 = vadd.f32 %v2438_v46, %v937_v1 }
 0x22a   :  { %v1443_v16 = vadd.f32 %v1927_v8, %v1251_v10 }
 0x22b   :  { %v1014_v6 = vpop.f32.mrf.mxu3 }
 0x22c   :  { %v1282_v7 = vadd.f32 %v2438_v46, %v1014_v6 }
 0x22e   :  { %v1474_v11 = vadd.f32 %v1988_v5, %v1282_v7 }
 0x22f   :  { %v939_v13 = vpop.f32.mrf.mxu1 }
 0x230   :  { %v2146_v14 = vpack.c.bf16 %v1474_v11, %v1473_v9  ;;  %v1252_v15 = vadd.f32 %v2438_v46, %v939_v13 }
 0x232   :  { %2213 = vst [vmem:[#allocation9 + $0xf0] sm:$0xff] %v2146_v14   ;;  %v1444_v17 = vadd.f32 %v1928_v12, %v1252_v15 }
 0x233   :  { %v1017_v18 = vpop.f32.mrf.mxu3 }
 0x234   :  { %v2071_v19 = vpack.c.bf16 %v1444_v17, %v1443_v16  ;;  %v1283_v21 = vadd.f32 %v2438_v46, %v1017_v18 }
 0x236   :  { %2198 = vst [vmem:[#allocation9 + $0x78] sm:$0xff] %v2071_v19   ;;  %v1475_v26 = vadd.f32 %v1991_v22, %v1283_v21 }
 0x23b   :  { %v1019_v24 = vpop.f32.mrf.mxu3 }
 0x23c   :  { %v1284_v25 = vadd.f32 %v2438_v46, %v1019_v24 }
 0x23e   :  { %v1476_v27 = vadd.f32 %v1992_v23, %v1284_v25 }
 0x240   :  { %v2151_v28 = vpack.c.bf16 %v1476_v27, %v1475_v26 }
 0x242   :  { %2214 = vst [vmem:[#allocation9 + $0xf8] sm:$0xff] %v2151_v28  }
 0x243   :  { %1617 = dma.vmem_to_hbm [thread:$0]  %s1610_s10, 4096, %s1612_s13, [#allocation5], %s2342_s26, %s2342_s26, %s2343_s27  }
 0x244   :  { %2339 = dma.done.wait [#allocation5], 4096  }
 0x245   :  { %2340 = vsyncadd [#allocation5], 4294963200 }
 0x246   :  { %1622 = vsyncpa [#allocation4], 1 }
 0x247   :  { %1623 = vsyncpa [#allocation7], 1 }
 0x248   :  { %1624 = vsyncpa [#allocation5], 1 }

// kernel: tpu_custom_call.1
= control target key start
LH: loop header
LB: loop body
LE: loop exit
PB: predicated region body
PF: predicated region fallthrough
CT: control target
= control target key end

     0   :  { %10 = vsyncpa [#allocation4], 0  ;;  %s2539_s0 = inlined_call_operand.hbm [shape: bf16[512,128], index: 0, kind: input, shape index: {}]   ;;  %s2540_s1 = inlined_call_operand.hbm [shape: bf16[128,128], index: 1, kind: input, shape index: {}]   ;;  %s2541_s2 = inlined_call_operand.vmem [shape: f32[1,128], index: 2, kind: input, shape index: {}]   ;;  %s2542_s3 = inlined_call_operand.hbm [shape: bf16[128,128], index: 3, kind: input, shape index: {}]   ;;  %s2543_s4 = inlined_call_operand.vmem [shape: f32[1,128], index: 4, kind: input, shape index: {}]   ;;  %s2544_s5 = inlined_call_operand.hbm [shape: bf16[512,128], index: 5, kind: output, shape index: {}]  }
   0x1   :  { %11 = vsyncpa [#allocation7], 0 }
   0x2   :  { %12 = vsyncpa [#allocation5], 0  ;;  %s30_s20 = sshll.u32 %s2540_s1, 4  ;;  %s2341_s21 = smov [#allocation6]   ;;  %s31_s20 = int_to_ptr.hbm [resolvable:$true] %s30_s20 }
   0x3   :  { %s32_s22 = sshll.u32 %s2341_s21, 4  ;;  %s17_s25 = sshll.u32 %s2539_s0, 4  ;;  %s33_s22 = int_to_ptr.vmem [resolvable:$true] %s32_s22  ;;  %s18_s25 = int_to_ptr.hbm [resolvable:$true] %s17_s25 }
   0x4   :  { %s2342_s26 = smov 64   ;;  %s2343_s27 = smov 4  }
   0x5   :  { %38 = dma.hbm_to_vmem [thread:$0]  %s31_s20, 1024, %s33_s22, [#allocation7], %s2342_s26, %s2342_s26, %s2343_s27  }
   0x6   :  { %s2344_s28 = smov [#allocation3]   ;;  %s45_s1 = sshll.u32 %s2542_s3, 4  ;;  %s46_s1 = int_to_ptr.hbm [resolvable:$true] %s45_s1 }
   0x7   :  { %s19_s29 = sshll.u32 %s2344_s28, 4  ;;  %s2345_s0 = smov [#allocation8]   ;;  %s20_s29 = int_to_ptr.vmem [resolvable:$true] %s19_s29 }
   0x8   :  { %25 = dma.hbm_to_vmem [thread:$0]  %s18_s25, 4096, %s20_s29, [#allocation4], %s2342_s26, %s2342_s26, %s2343_s27  }
   0x9   :  { %s47_s7 = sshll.u32 %s2345_s0, 4  ;;  %s48_s7 = int_to_ptr.vmem [resolvable:$true] %s47_s7 }
   0xa   :  { %53 = dma.hbm_to_vmem [thread:$0]  %s46_s1, 1024, %s48_s7, [#allocation7], %s2342_s26, %s2342_s26, %s2343_s27  }
   0xb   :  { %2335 = dma.done.wait [#allocation4], 4096  }
   0xc   :  { %2336 = vsyncadd [#allocation4], 4294963200 }
   0xd   :  { %2337 = dma.done.wait [#allocation7], 2048  }
   0xe   :  { %2338 = vsyncadd [#allocation7], 4294965248  ;;  %v1856_v0 = vld [vmem:[#allocation6 + $0x38] sm:$0xff]  ;;  %v1855_v1 = vld [vmem:[#allocation6 + $0x30] sm:$0xff]  ;;  %s1611_s13 = sshll.u32 %s2544_s5, 4  ;;  %s1612_s13 = int_to_ptr.hbm [resolvable:$true] %s1611_s13 }
   0xf   :  { %460 = vmatpush.bf16.msra.mxu0 %v1856_v0  ;;  %2215 = vmatpush.bf16.msra.mxu2 %v1856_v0  ;;  %v1854_v2 = vld [vmem:[#allocation6 + $0x28] sm:$0xff]  ;;  %v1853_v3 = vld [vmem:[#allocation6 + $0x20] sm:$0xff]  ;;  %v1852_v4 = vld [vmem:[#allocation6 + $0x18] sm:$0xff] }
  0x10   :  { %v1851_v5 = vld [vmem:[#allocation6 + $0x10] sm:$0xff]  ;;  %v1850_v6 = vld [vmem:[#allocation6 + $0x8] sm:$0xff]  ;;  %v1849_v7 = vld [vmem:[#allocation6] sm:$0xff] }
  0x11   :  { %v1817_v8 = vld [vmem:[#allocation3] sm:$0xff]  ;;  %v1818_v10 = vld [vmem:[#allocation3 + $0x8] sm:$0xff]  ;;  %v1819_v12 = vld [vmem:[#allocation3 + $0x10] sm:$0xff] }
  0x12   :  { %v1833_v9 = vld [vmem:[#allocation3 + $0x80] sm:$0xff]  ;;  %v1834_v11 = vld [vmem:[#allocation3 + $0x88] sm:$0xff]  ;;  %v1835_v13 = vld [vmem:[#allocation3 + $0x90] sm:$0xff] }
  0x13   :  { %461 = vmatpush.bf16.msra.mxu0 %v1855_v1  ;;  %2216 = vmatpush.bf16.msra.mxu2 %v1855_v1  ;;  %v1820_v14 = vld [vmem:[#allocation3 + $0x18] sm:$0xff]  ;;  %v1821_v16 = vld [vmem:[#allocation3 + $0x20] sm:$0xff]  ;;  %v1822_v19 = vld [vmem:[#allocation3 + $0x28] sm:$0xff] }
  0x14   :  { %v1836_v15 = vld [vmem:[#allocation3 + $0x98] sm:$0xff]  ;;  %v1837_v17 = vld [vmem:[#allocation3 + $0xa0] sm:$0xff]  ;;  %v1838_v20 = vld [vmem:[#allocation3 + $0xa8] sm:$0xff] }
  0x15   :  { %v1864_v18 = vld [vmem:[#allocation8 + $0x38] sm:$0xff]  ;;  %v1863_v21 = vld [vmem:[#allocation8 + $0x30] sm:$0xff]  ;;  %v1862_v22 = vld [vmem:[#allocation8 + $0x28] sm:$0xff] }
  0x16   :  { %853 = vmatpush.bf16.msra.mxu1 %v1864_v18  ;;  %2223 = vmatpush.bf16.msra.mxu3 %v1864_v18  ;;  %v1861_v23 = vld [vmem:[#allocation8 + $0x20] sm:$0xff]  ;;  %v1860_v24 = vld [vmem:[#allocation8 + $0x18] sm:$0xff]  ;;  %v1823_v25 = vld [vmem:[#allocation3 + $0x30] sm:$0xff] }
  0x17   :  { %462 = vmatpush.bf16.msra.mxu0 %v1854_v2  ;;  %2217 = vmatpush.bf16.msra.mxu2 %v1854_v2  ;;  %v1839_v26 = vld [vmem:[#allocation3 + $0xb0] sm:$0xff]  ;;  %v1858_v28 = vld [vmem:[#allocation8 + $0x8] sm:$0xff]  ;;  %v1857_v29 = vld [vmem:[#allocation8] sm:$0xff] }
  0x18   :  { %v1859_v27 = vld [vmem:[#allocation8 + $0x10] sm:$0xff]  ;;  %v1824_v30 = vld [vmem:[#allocation3 + $0x38] sm:$0xff]  ;;  %v1825_v32 = vld [vmem:[#allocation3 + $0x40] sm:$0xff] }
  0x19   :  { %v1840_v31 = vld [vmem:[#allocation3 + $0xb8] sm:$0xff]  ;;  %v1841_v33 = vld [vmem:[#allocation3 + $0xc0] sm:$0xff]  ;;  %v1826_v46 = vld [vmem:[#allocation3 + $0x48] sm:$0xff] }
  0x1a   :  { %854 = vmatpush.bf16.msra.mxu1 %v1863_v21  ;;  %2224 = vmatpush.bf16.msra.mxu3 %v1863_v21  ;;  %v2398_v35 = vld [vmem:[%s2541_s2] ss:$0 sm:$0xff]  ;;  %v1842_v47 = vld [vmem:[#allocation3 + $0xc8] sm:$0xff]  ;;  %v1827_v62 = vld [vmem:[#allocation3 + $0x50] sm:$0xff] }
  0x1b   :  { %463 = vmatpush.bf16.msra.mxu0 %v1853_v3  ;;  %2218 = vmatpush.bf16.msra.mxu2 %v1853_v3  ;;  %v1843_v63 = vld [vmem:[#allocation3 + $0xd0] sm:$0xff] }
  0x1e   :  { %855 = vmatpush.bf16.msra.mxu1 %v1862_v22  ;;  %2225 = vmatpush.bf16.msra.mxu3 %v1862_v22 }
  0x1f   :  { %464 = vmatpush.bf16.msra.mxu0 %v1852_v4  ;;  %2219 = vmatpush.bf16.msra.mxu2 %v1852_v4 }
  0x22   :  { %856 = vmatpush.bf16.msra.mxu1 %v1861_v23  ;;  %2226 = vmatpush.bf16.msra.mxu3 %v1861_v23 }
  0x23   :  { %465 = vmatpush.bf16.msra.mxu0 %v1851_v5  ;;  %2220 = vmatpush.bf16.msra.mxu2 %v1851_v5 }
  0x26   :  { %857 = vmatpush.bf16.msra.mxu1 %v1860_v24  ;;  %2227 = vmatpush.bf16.msra.mxu3 %v1860_v24 }
  0x27   :  { %466 = vmatpush.bf16.msra.mxu0 %v1850_v6  ;;  %2221 = vmatpush.bf16.msra.mxu2 %v1850_v6 }
  0x2a   :  { %858 = vmatpush.bf16.msra.mxu1 %v1859_v27  ;;  %2228 = vmatpush.bf16.msra.mxu3 %v1859_v27 }
  0x2b   :  { %467 = vmatpush.bf16.msra.mxu0 %v1849_v7  ;;  %2222 = vmatpush.bf16.msra.mxu2 %v1849_v7 }
  0x2e   :  { %468 = vmatmul.bf16.vlgmr.msra.gmra.mxu0 %v1817_v8  ;;  %548 = vmatmul.bf16.vlgmr.msra.gmra.mxu2 %v1833_v9 }
  0x2f   :  { %859 = vmatpush.bf16.msra.mxu1 %v1858_v28  ;;  %2229 = vmatpush.bf16.msra.mxu3 %v1858_v28 }
  0x33   :  { %860 = vmatpush.bf16.msra.mxu1 %v1857_v29  ;;  %2230 = vmatpush.bf16.msra.mxu3 %v1857_v29 }
  0x3e   :  { %473 = vmatmul.bf16.gmra.mxu0 %v1818_v10  ;;  %553 = vmatmul.bf16.gmra.mxu2 %v1834_v11 }
  0x4e   :  { %478 = vmatmul.bf16.gmra.mxu0 %v1819_v12  ;;  %558 = vmatmul.bf16.gmra.mxu2 %v1835_v13 }
  0x5e   :  { %483 = vmatmul.bf16.gmra.mxu0 %v1820_v14  ;;  %563 = vmatmul.bf16.gmra.mxu2 %v1836_v15  ;;  %v1828_v14 = vld [vmem:[#allocation3 + $0x58] sm:$0xff] }
  0x5f   :  { %v1844_v15 = vld [vmem:[#allocation3 + $0xd8] sm:$0xff] }
  0x6e   :  { %488 = vmatmul.bf16.gmra.mxu0 %v1821_v16  ;;  %568 = vmatmul.bf16.gmra.mxu2 %v1837_v17 }
  0x7e   :  { %493 = vmatmul.bf16.gmra.mxu0 %v1822_v19  ;;  %573 = vmatmul.bf16.gmra.mxu2 %v1838_v20 }
  0x8e   :  { %498 = vmatmul.bf16.gmra.mxu0 %v1823_v25  ;;  %578 = vmatmul.bf16.gmra.mxu2 %v1839_v26 }
  0x9e   :  { %503 = vmatmul.bf16.gmra.mxu0 %v1824_v30  ;;  %583 = vmatmul.bf16.gmra.mxu2 %v1840_v31  ;;  %v1829_v30 = vld [vmem:[#allocation3 + $0x60] sm:$0xff] }
  0x9f   :  { %v1845_v31 = vld [vmem:[#allocation3 + $0xe0] sm:$0xff] }
  0xab   :  { %v469_v34 = vpop.f32.mrf.mxu0 }
  0xac   :  { %v470_v36 = vadd.f32 %v2398_v35, %v469_v34 }
  0xae   :  { %508 = vmatmul.bf16.gmra.mxu0 %v1825_v32  ;;  %588 = vmatmul.bf16.gmra.mxu2 %v1841_v33  ;;  %v629_v39 = vmax.f32 %v470_v36, 0.0 }
  0xb1   :  { %v549_v37 = vpop.f32.mrf.mxu2 }
  0xb2   :  { %v550_v42 = vadd.f32 %v2398_v35, %v549_v37 }
  0xb3   :  { %v471_v38 = vpop.f32.mrf.mxu0 }
  0xb4   :  { %v472_v40 = vadd.f32 %v2398_v35, %v471_v38  ;;  %v661_v49 = vmax.f32 %v550_v42, 0.0 }
  0xb6   :  { %v630_v41 = vmax.f32 %v472_v40, 0.0 }
  0xb8   :  { %v757_v43 = vpack.c.bf16 %v630_v41, %v629_v39 }
  0xb9   :  { %v551_v44 = vpop.f32.mrf.mxu2 }
  0xba   :  { %v552_v45 = vadd.f32 %v2398_v35, %v551_v44  ;;  %861 = vmatmul.bf16.vlgmr.msra.gmra.mxu1 %v757_v43 }
  0xbb   :  { %v474_v48 = vpop.f32.mrf.mxu0 }
  0xbc   :  { %v662_v50 = vmax.f32 %v552_v45, 0.0  ;;  %v475_v52 = vadd.f32 %v2398_v35, %v474_v48  ;;  %v1846_v48 = vld [vmem:[#allocation3 + $0xe8] sm:$0xff] }
  0xbe   :  { %513 = vmatmul.bf16.gmra.mxu0 %v1826_v46  ;;  %593 = vmatmul.bf16.gmra.mxu2 %v1842_v47  ;;  %v773_v51 = vpack.c.bf16 %v662_v50, %v661_v49  ;;  %v631_v55 = vmax.f32 %v475_v52, 0.0  ;;  %v1830_v47 = vld [vmem:[#allocation3 + $0x68] sm:$0xff] }
  0xc0   :  { %941 = vmatmul.bf16.vlgmr.msra.gmra.mxu3 %v773_v51 }
  0xc1   :  { %v554_v53 = vpop.f32.mrf.mxu2 }
  0xc2   :  { %v555_v58 = vadd.f32 %v2398_v35, %v554_v53 }
  0xc3   :  { %v476_v54 = vpop.f32.mrf.mxu0 }
  0xc4   :  { %v477_v56 = vadd.f32 %v2398_v35, %v476_v54  ;;  %v663_v1 = vmax.f32 %v555_v58, 0.0 }
  0xc6   :  { %v632_v57 = vmax.f32 %v477_v56, 0.0 }
  0xc8   :  { %v758_v59 = vpack.c.bf16 %v632_v57, %v631_v55 }
  0xc9   :  { %v556_v60 = vpop.f32.mrf.mxu2 }
  0xca   :  { %v557_v61 = vadd.f32 %v2398_v35, %v556_v60  ;;  %866 = vmatmul.bf16.gmra.mxu1 %v758_v59 }
  0xcb   :  { %v479_v0 = vpop.f32.mrf.mxu0 }
  0xcc   :  { %v664_v2 = vmax.f32 %v557_v61, 0.0  ;;  %v480_v4 = vadd.f32 %v2398_v35, %v479_v0  ;;  %v1847_v0 = vld [vmem:[#allocation3 + $0xf0] sm:$0xff] }
  0xce   :  { %518 = vmatmul.bf16.gmra.mxu0 %v1827_v62  ;;  %598 = vmatmul.bf16.gmra.mxu2 %v1843_v63  ;;  %v774_v3 = vpack.c.bf16 %v664_v2, %v663_v1  ;;  %v633_v7 = vmax.f32 %v480_v4, 0.0  ;;  %v1831_v63 = vld [vmem:[#allocation3 + $0x70] sm:$0xff] }
  0xd0   :  { %946 = vmatmul.bf16.gmra.mxu3 %v774_v3 }
  0xd1   :  { %v559_v5 = vpop.f32.mrf.mxu2 }
  0xd2   :  { %v560_v10 = vadd.f32 %v2398_v35, %v559_v5 }
  0xd3   :  { %v481_v6 = vpop.f32.mrf.mxu0 }
  0xd4   :  { %v482_v8 = vadd.f32 %v2398_v35, %v481_v6  ;;  %v665_v17 = vmax.f32 %v560_v10, 0.0 }
  0xd6   :  { %v634_v9 = vmax.f32 %v482_v8, 0.0 }
  0xd8   :  { %v759_v11 = vpack.c.bf16 %v634_v9, %v633_v7 }
  0xd9   :  { %v561_v12 = vpop.f32.mrf.mxu2 }
  0xda   :  { %v562_v13 = vadd.f32 %v2398_v35, %v561_v12  ;;  %871 = vmatmul.bf16.gmra.mxu1 %v759_v11 }
  0xdb   :  { %v484_v16 = vpop.f32.mrf.mxu0 }
  0xdc   :  { %v666_v18 = vmax.f32 %v562_v13, 0.0  ;;  %v485_v20 = vadd.f32 %v2398_v35, %v484_v16  ;;  %v1848_v16 = vld [vmem:[#allocation3 + $0xf8] sm:$0xff] }
  0xde   :  { %523 = vmatmul.bf16.gmra.mxu0 %v1828_v14  ;;  %603 = vmatmul.bf16.gmra.mxu2 %v1844_v15  ;;  %v775_v19 = vpack.c.bf16 %v666_v18, %v665_v17  ;;  %v635_v23 = vmax.f32 %v485_v20, 0.0  ;;  %v1832_v15 = vld [vmem:[#allocation3 + $0x78] sm:$0xff] }
  0xe0   :  { %951 = vmatmul.bf16.gmra.mxu3 %v775_v19 }
  0xe1   :  { %v564_v21 = vpop.f32.mrf.mxu2 }
  0xe2   :  { %v565_v26 = vadd.f32 %v2398_v35, %v564_v21 }
  0xe3   :  { %v486_v22 = vpop.f32.mrf.mxu0 }
  0xe4   :  { %v487_v24 = vadd.f32 %v2398_v35, %v486_v22  ;;  %v667_v33 = vmax.f32 %v565_v26, 0.0 }
  0xe6   :  { %v636_v25 = vmax.f32 %v487_v24, 0.0 }
  0xe8   :  { %v760_v27 = vpack.c.bf16 %v636_v25, %v635_v23 }
  0xe9   :  { %v566_v28 = vpop.f32.mrf.mxu2 }
  0xea   :  { %v567_v29 = vadd.f32 %v2398_v35, %v566_v28  ;;  %876 = vmatmul.bf16.gmra.mxu1 %v760_v27 }
  0xeb   :  { %v489_v32 = vpop.f32.mrf.mxu0 }
  0xec   :  { %v668_v34 = vmax.f32 %v567_v29, 0.0  ;;  %v490_v37 = vadd.f32 %v2398_v35, %v489_v32 }
  0xee   :  { %528 = vmatmul.bf16.gmra.mxu0 %v1829_v30  ;;  %608 = vmatmul.bf16.gmra.mxu2 %v1845_v31  ;;  %v776_v36 = vpack.c.bf16 %v668_v34, %v667_v33  ;;  %v637_v40 = vmax.f32 %v490_v37, 0.0 }
  0xf0   :  { %956 = vmatmul.bf16.gmra.mxu3 %v776_v36 }
  0xf1   :  { %v569_v38 = vpop.f32.mrf.mxu2 }
  0xf2   :  { %v570_v43 = vadd.f32 %v2398_v35, %v569_v38 }
  0xf3   :  { %v491_v39 = vpop.f32.mrf.mxu0 }
  0xf4   :  { %v492_v41 = vadd.f32 %v2398_v35, %v491_v39  ;;  %v669_v50 = vmax.f32 %v570_v43, 0.0 }
  0xf6   :  { %v638_v42 = vmax.f32 %v492_v41, 0.0 }
  0xf8   :  { %v761_v44 = vpack.c.bf16 %v638_v42, %v637_v40 }
  0xf9   :  { %v571_v45 = vpop.f32.mrf.mxu2 }
  0xfa   :  { %v572_v46 = vadd.f32 %v2398_v35, %v571_v45  ;;  %881 = vmatmul.bf16.gmra.mxu1 %v761_v44 }
  0xfb   :  { %v494_v49 = vpop.f32.mrf.mxu0 }
  0xfc   :  { %v670_v51 = vmax.f32 %v572_v46, 0.0  ;;  %v495_v53 = vadd.f32 %v2398_v35, %v494_v49  ;;  %v2438_v46 = vld [vmem:[%s2543_s4] ss:$0 sm:$0xff]  ;;  %s2346_s4 = smov [#allocation9]  }
  0xfd   :  { %s1609_s10 = sshll.u32 %s2346_s4, 4  ;;  %s1610_s10 = int_to_ptr.vmem [resolvable:$true] %s1609_s10 }
  0xfe   :  { %533 = vmatmul.bf16.gmra.mxu0 %v1830_v47  ;;  %613 = vmatmul.bf16.gmra.mxu2 %v1846_v48  ;;  %v777_v52 = vpack.c.bf16 %v670_v51, %v669_v50  ;;  %v639_v56 = vmax.f32 %v495_v53, 0.0  ;;  %v1866_v48 = vld [vmem:[#allocation3] sm:$0xff]  }
  0xff   :  { %v1867_v53 = vunpack.c.l.bf16 %v1866_v48 }
 0x100   :  { %961 = vmatmul.bf16.gmra.mxu3 %v777_v52 }
 0x101   :  { %v574_v54 = vpop.f32.mrf.mxu2 }
 0x102   :  { %v575_v59 = vadd.f32 %v2398_v35, %v574_v54  ;;  %v1868_v54 = vunpack.c.h.bf16 %v1866_v48 }
 0x103   :  { %v496_v55 = vpop.f32.mrf.mxu0 }
 0x104   :  { %v497_v57 = vadd.f32 %v2398_v35, %v496_v55  ;;  %v671_v2 = vmax.f32 %v575_v59, 0.0 }
 0x106   :  { %v640_v58 = vmax.f32 %v497_v57, 0.0 }
 0x108   :  { %v762_v60 = vpack.c.bf16 %v640_v58, %v639_v56 }
 0x109   :  { %v576_v61 = vpop.f32.mrf.mxu2 }
 0x10a   :  { %v577_v62 = vadd.f32 %v2398_v35, %v576_v61  ;;  %886 = vmatmul.bf16.gmra.mxu1 %v762_v60 }
 0x10b   :  { %v499_v1 = vpop.f32.mrf.mxu0 }
 0x10c   :  { %v672_v3 = vmax.f32 %v577_v62, 0.0  ;;  %v500_v5 = vadd.f32 %v2398_v35, %v499_v1 }
 0x10e   :  { %538 = vmatmul.bf16.gmra.mxu0 %v1831_v63  ;;  %618 = vmatmul.bf16.gmra.mxu2 %v1847_v0  ;;  %v778_v4 = vpack.c.bf16 %v672_v3, %v671_v2  ;;  %v641_v8 = vmax.f32 %v500_v5, 0.0 }
 0x110   :  { %966 = vmatmul.bf16.gmra.mxu3 %v778_v4  ;;  %v2168_v4 = vld [vmem:[#allocation3 + $0x80] sm:$0xff]  }
 0x111   :  { %v579_v6 = vpop.f32.mrf.mxu2 }
 0x112   :  { %v580_v11 = vadd.f32 %v2398_v35, %v579_v6 }
 0x113   :  { %v501_v7 = vpop.f32.mrf.mxu0 }
 0x114   :  { %v502_v9 = vadd.f32 %v2398_v35, %v501_v7  ;;  %v673_v18 = vmax.f32 %v580_v11, 0.0  ;;  %v2153_v11 = vld [vmem:[#allocation3 + $0x8] sm:$0xff]  }
 0x116   :  { %v642_v10 = vmax.f32 %v502_v9, 0.0 }
 0x118   :  { %v763_v12 = vpack.c.bf16 %v642_v10, %v641_v8  ;;  %v1931_v10 = vunpack.c.l.bf16 %v2168_v4 }
 0x119   :  { %v581_v13 = vpop.f32.mrf.mxu2 }
 0x11a   :  { %v582_v14 = vadd.f32 %v2398_v35, %v581_v13  ;;  %891 = vmatmul.bf16.gmra.mxu1 %v763_v12  ;;  %v1932_v13 = vunpack.c.h.bf16 %v2168_v4 }
 0x11b   :  { %v504_v17 = vpop.f32.mrf.mxu0 }
 0x11c   :  { %v674_v19 = vmax.f32 %v582_v14, 0.0  ;;  %v505_v21 = vadd.f32 %v2398_v35, %v504_v17 }
 0x11e   :  { %543 = vmatmul.bf16.gmra.mxu0 %v1832_v15  ;;  %623 = vmatmul.bf16.gmra.mxu2 %v1848_v16  ;;  %v779_v20 = vpack.c.bf16 %v674_v19, %v673_v18  ;;  %v643_v24 = vmax.f32 %v505_v21, 0.0  ;;  %v1871_v19 = vunpack.c.l.bf16 %v2153_v11 }
 0x120   :  { %971 = vmatmul.bf16.gmra.mxu3 %v779_v20  ;;  %v1872_v20 = vunpack.c.h.bf16 %v2153_v11 }
 0x121   :  { %v584_v22 = vpop.f32.mrf.mxu2 }
 0x122   :  { %v585_v27 = vadd.f32 %v2398_v35, %v584_v22 }
 0x123   :  { %v506_v23 = vpop.f32.mrf.mxu0 }
 0x124   :  { %v507_v25 = vadd.f32 %v2398_v35, %v506_v23  ;;  %v675_v32 = vmax.f32 %v585_v27, 0.0 }
 0x126   :  { %v644_v26 = vmax.f32 %v507_v25, 0.0 }
 0x128   :  { %v764_v28 = vpack.c.bf16 %v644_v26, %v643_v24 }
 0x129   :  { %v586_v29 = vpop.f32.mrf.mxu2 }
 0x12a   :  { %v587_v30 = vadd.f32 %v2398_v35, %v586_v29  ;;  %896 = vmatmul.bf16.gmra.mxu1 %v764_v28 }
 0x12b   :  { %v509_v31 = vpop.f32.mrf.mxu0 }
 0x12c   :  { %v676_v33 = vmax.f32 %v587_v30, 0.0  ;;  %v510_v36 = vadd.f32 %v2398_v35, %v509_v31 }
 0x12e   :  { %v780_v34 = vpack.c.bf16 %v676_v33, %v675_v32  ;;  %v645_v39 = vmax.f32 %v510_v36, 0.0 }
 0x130   :  { %976 = vmatmul.bf16.gmra.mxu3 %v780_v34 }
 0x131   :  { %v589_v37 = vpop.f32.mrf.mxu2 }
 0x132   :  { %v590_v43 = vadd.f32 %v2398_v35, %v589_v37 }
 0x133   :  { %v511_v38 = vpop.f32.mrf.mxu0 }
 0x134   :  { %v512_v40 = vadd.f32 %v2398_v35, %v511_v38  ;;  %v677_v50 = vmax.f32 %v590_v43, 0.0 }
 0x136   :  { %v646_v41 = vmax.f32 %v512_v40, 0.0 }
 0x137   :  { %v862_v42 = vpop.f32.mrf.mxu1 }
 0x138   :  { %v765_v44 = vpack.c.bf16 %v646_v41, %v645_v39  ;;  %v1221_v52 = vadd.f32 %v2438_v46, %v862_v42  ;;  %v2169_v39 = vld [vmem:[#allocation3 + $0x88] sm:$0xff]  }
 0x139   :  { %v591_v45 = vpop.f32.mrf.mxu2 }
 0x13a   :  { %v592_v47 = vadd.f32 %v2398_v35, %v591_v45  ;;  %901 = vmatmul.bf16.gmra.mxu1 %v765_v44  ;;  %v1413_v60 = vadd.f32 %v1867_v53, %v1221_v52  ;;  %v1935_v45 = vunpack.c.l.bf16 %v2169_v39 }
 0x13b   :  { %v514_v49 = vpop.f32.mrf.mxu0 }
 0x13c   :  { %v678_v51 = vmax.f32 %v592_v47, 0.0  ;;  %v515_v57 = vadd.f32 %v2398_v35, %v514_v49  ;;  %v2154_v47 = vld [vmem:[#allocation3 + $0x10] sm:$0xff]   ;;  %v1936_v49 = vunpack.c.h.bf16 %v2169_v39 }
 0x13e   :  { %v781_v55 = vpack.c.bf16 %v678_v51, %v677_v50  ;;  %v647_v0 = vmax.f32 %v515_v57, 0.0 }
 0x13f   :  { %v864_v56 = vpop.f32.mrf.mxu1 }
 0x140   :  { %v1222_v58 = vadd.f32 %v2438_v46, %v864_v56  ;;  %981 = vmatmul.bf16.gmra.mxu3 %v781_v55  ;;  %v1875_v55 = vunpack.c.l.bf16 %v2154_v47  ;;  %v1876_v56 = vunpack.c.h.bf16 %v2154_v47 }
 0x141   :  { %v594_v59 = vpop.f32.mrf.mxu2 }
 0x142   :  { %v1414_v61 = vadd.f32 %v1868_v54, %v1222_v58  ;;  %v595_v6 = vadd.f32 %v2398_v35, %v594_v59 }
 0x143   :  { %v516_v62 = vpop.f32.mrf.mxu0  ;;  %v942_v63 = vpop.f32.mrf.mxu3 }
 0x144   :  { %v1996_v1 = vpack.c.bf16 %v1414_v61, %v1413_v60  ;;  %v517_v2 = vadd.f32 %v2398_v35, %v516_v62  ;;  %v1253_v9 = vadd.f32 %v2438_v46, %v942_v63  ;;  %v679_v16 = vmax.f32 %v595_v6, 0.0 }
 0x146   :  { %1997 = vst [vmem:[#allocation9] sm:$0xff] %v1996_v1   ;;  %v648_v3 = vmax.f32 %v517_v2, 0.0  ;;  %v1445_v21 = vadd.f32 %v1931_v10, %v1253_v9  ;;  %v2170_v10 = vld [vmem:[#allocation3 + $0x90] sm:$0xff]  }
 0x147   :  { %v867_v5 = vpop.f32.mrf.mxu1 }
 0x148   :  { %v766_v7 = vpack.c.bf16 %v648_v3, %v647_v0  ;;  %v1223_v22 = vadd.f32 %v2438_v46, %v867_v5 }
 0x149   :  { %v596_v8 = vpop.f32.mrf.mxu2 }
 0x14a   :  { %v597_v12 = vadd.f32 %v2398_v35, %v596_v8  ;;  %906 = vmatmul.bf16.gmra.mxu1 %v766_v7  ;;  %v1415_v30 = vadd.f32 %v1871_v19, %v1223_v22  ;;  %v1940_v19 = vunpack.c.h.bf16 %v2170_v10 }
 0x14b   :  { %v519_v14 = vpop.f32.mrf.mxu0  ;;  %v944_v15 = vpop.f32.mrf.mxu3 }
 0x14c   :  { %v680_v17 = vmax.f32 %v597_v12, 0.0  ;;  %v1254_v18 = vadd.f32 %v2438_v46, %v944_v15  ;;  %v520_v26 = vadd.f32 %v2398_v35, %v519_v14 }
 0x14e   :  { %v1446_v23 = vadd.f32 %v1932_v13, %v1254_v18  ;;  %v782_v24 = vpack.c.bf16 %v680_v17, %v679_v16  ;;  %v649_v34 = vmax.f32 %v520_v26, 0.0  ;;  %v1939_v16 = vunpack.c.l.bf16 %v2170_v10  ;;  %v2155_v17 = vld [vmem:[#allocation3 + $0x18] sm:$0xff]  }
 0x14f   :  { %v869_v25 = vpop.f32.mrf.mxu1  ;;  %v1880_v26 = vunpack.c.h.bf16 %v2155_v17 }
 0x150   :  { %v2076_v27 = vpack.c.bf16 %v1446_v23, %v1445_v21  ;;  %v1224_v28 = vadd.f32 %v2438_v46, %v869_v25  ;;  %986 = vmatmul.bf16.gmra.mxu3 %v782_v24  ;;  %v1879_v25 = vunpack.c.l.bf16 %v2155_v17 }
 0x151   :  { %v599_v29 = vpop.f32.mrf.mxu2 }
 0x152   :  { %2199 = vst [vmem:[#allocation9 + $0x80] sm:$0xff] %v2076_v27   ;;  %v1416_v31 = vadd.f32 %v1872_v20, %v1224_v28  ;;  %v600_v41 = vadd.f32 %v2398_v35, %v599_v29 }
 0x153   :  { %v521_v32 = vpop.f32.mrf.mxu0  ;;  %v947_v33 = vpop.f32.mrf.mxu3 }
 0x154   :  { %v2001_v36 = vpack.c.bf16 %v1416_v31, %v1415_v30  ;;  %v522_v37 = vadd.f32 %v2398_v35, %v521_v32  ;;  %v1255_v44 = vadd.f32 %v2438_v46, %v947_v33  ;;  %v681_v52 = vmax.f32 %v600_v41, 0.0 }
 0x156   :  { %2184 = vst [vmem:[#allocation9 + $0x8] sm:$0xff] %v2001_v36   ;;  %v650_v38 = vmax.f32 %v522_v37, 0.0  ;;  %v1447_v57 = vadd.f32 %v1935_v45, %v1255_v44  ;;  %v2171_v45 = vld [vmem:[#allocation3 + $0x98] sm:$0xff]  }
 0x157   :  { %v872_v40 = vpop.f32.mrf.mxu1 }
 0x158   :  { %v767_v42 = vpack.c.bf16 %v650_v38, %v649_v34  ;;  %v1225_v58 = vadd.f32 %v2438_v46, %v872_v40 }
 0x159   :  { %v601_v43 = vpop.f32.mrf.mxu2 }
 0x15a   :  { %v602_v48 = vadd.f32 %v2398_v35, %v601_v43  ;;  %911 = vmatmul.bf16.gmra.mxu1 %v767_v42  ;;  %v1417_v2 = vadd.f32 %v1875_v55, %v1225_v58  ;;  %v1944_v55 = vunpack.c.h.bf16 %v2171_v45 }
 0x15b   :  { %v524_v50 = vpop.f32.mrf.mxu0  ;;  %v949_v51 = vpop.f32.mrf.mxu3 }
 0x15c   :  { %v682_v53 = vmax.f32 %v602_v48, 0.0  ;;  %v1256_v54 = vadd.f32 %v2438_v46, %v949_v51  ;;  %v525_v62 = vadd.f32 %v2398_v35, %v524_v50 }
 0x15e   :  { %v1448_v59 = vadd.f32 %v1936_v49, %v1256_v54  ;;  %v783_v60 = vpack.c.bf16 %v682_v53, %v681_v52  ;;  %v651_v6 = vmax.f32 %v525_v62, 0.0  ;;  %v1943_v52 = vunpack.c.l.bf16 %v2171_v45  ;;  %v2156_v53 = vld [vmem:[#allocation3 + $0x20] sm:$0xff]  }
 0x15f   :  { %v874_v61 = vpop.f32.mrf.mxu1  ;;  %v1884_v62 = vunpack.c.h.bf16 %v2156_v53 }
 0x160   :  { %v2081_v63 = vpack.c.bf16 %v1448_v59, %v1447_v57  ;;  %v1226_v0 = vadd.f32 %v2438_v46, %v874_v61  ;;  %991 = vmatmul.bf16.gmra.mxu3 %v783_v60  ;;  %v1883_v61 = vunpack.c.l.bf16 %v2156_v53 }
 0x161   :  { %v604_v1 = vpop.f32.mrf.mxu2 }
 0x162   :  { %2200 = vst [vmem:[#allocation9 + $0x88] sm:$0xff] %v2081_v63   ;;  %v1418_v3 = vadd.f32 %v1876_v56, %v1226_v0  ;;  %v605_v12 = vadd.f32 %v2398_v35, %v604_v1 }
 0x163   :  { %v526_v4 = vpop.f32.mrf.mxu0  ;;  %v952_v5 = vpop.f32.mrf.mxu3 }
 0x164   :  { %v2006_v7 = vpack.c.bf16 %v1418_v3, %v1417_v2  ;;  %v527_v8 = vadd.f32 %v2398_v35, %v526_v4  ;;  %v1257_v15 = vadd.f32 %v2438_v46, %v952_v5  ;;  %v683_v22 = vmax.f32 %v605_v12, 0.0 }
 0x166   :  { %2185 = vst [vmem:[#allocation9 + $0x10] sm:$0xff] %v2006_v7   ;;  %v652_v9 = vmax.f32 %v527_v8, 0.0  ;;  %v1449_v27 = vadd.f32 %v1939_v16, %v1257_v15  ;;  %v2172_v16 = vld [vmem:[#allocation3 + $0xa0] sm:$0xff]  }
 0x167   :  { %v877_v11 = vpop.f32.mrf.mxu1 }
 0x168   :  { %v768_v13 = vpack.c.bf16 %v652_v9, %v651_v6  ;;  %v1227_v28 = vadd.f32 %v2438_v46, %v877_v11 }
 0x169   :  { %v606_v14 = vpop.f32.mrf.mxu2 }
 0x16a   :  { %v607_v18 = vadd.f32 %v2398_v35, %v606_v14  ;;  %916 = vmatmul.bf16.gmra.mxu1 %v768_v13  ;;  %v1419_v37 = vadd.f32 %v1879_v25, %v1227_v28  ;;  %v1948_v25 = vunpack.c.h.bf16 %v2172_v16 }
 0x16b   :  { %v529_v20 = vpop.f32.mrf.mxu0  ;;  %v954_v21 = vpop.f32.mrf.mxu3 }
 0x16c   :  { %v684_v23 = vmax.f32 %v607_v18, 0.0  ;;  %v1258_v24 = vadd.f32 %v2438_v46, %v954_v21  ;;  %v530_v32 = vadd.f32 %v2398_v35, %v529_v20 }
 0x16e   :  { %v1450_v29 = vadd.f32 %v1940_v19, %v1258_v24  ;;  %v784_v30 = vpack.c.bf16 %v684_v23, %v683_v22  ;;  %v653_v41 = vmax.f32 %v530_v32, 0.0  ;;  %v1947_v22 = vunpack.c.l.bf16 %v2172_v16  ;;  %v2157_v23 = vld [vmem:[#allocation3 + $0x28] sm:$0xff]  }
 0x16f   :  { %v879_v31 = vpop.f32.mrf.mxu1  ;;  %v1888_v32 = vunpack.c.h.bf16 %v2157_v23 }
 0x170   :  { %v2086_v33 = vpack.c.bf16 %v1450_v29, %v1449_v27  ;;  %v1228_v34 = vadd.f32 %v2438_v46, %v879_v31  ;;  %996 = vmatmul.bf16.gmra.mxu3 %v784_v30  ;;  %v1887_v31 = vunpack.c.l.bf16 %v2157_v23 }
 0x171   :  { %v609_v36 = vpop.f32.mrf.mxu2 }
 0x172   :  { %2201 = vst [vmem:[#allocation9 + $0x90] sm:$0xff] %v2086_v33   ;;  %v1420_v38 = vadd.f32 %v1880_v26, %v1228_v34  ;;  %v610_v48 = vadd.f32 %v2398_v35, %v609_v36 }
 0x173   :  { %v531_v39 = vpop.f32.mrf.mxu0  ;;  %v957_v40 = vpop.f32.mrf.mxu3 }
 0x174   :  { %v2011_v42 = vpack.c.bf16 %v1420_v38, %v1419_v37  ;;  %v532_v43 = vadd.f32 %v2398_v35, %v531_v39  ;;  %v1259_v51 = vadd.f32 %v2438_v46, %v957_v40  ;;  %v685_v58 = vmax.f32 %v610_v48, 0.0 }
 0x176   :  { %2186 = vst [vmem:[#allocation9 + $0x18] sm:$0xff] %v2011_v42   ;;  %v654_v44 = vmax.f32 %v532_v43, 0.0  ;;  %v1451_v63 = vadd.f32 %v1943_v52, %v1259_v51  ;;  %v2173_v52 = vld [vmem:[#allocation3 + $0xa8] sm:$0xff]  }
 0x177   :  { %v882_v47 = vpop.f32.mrf.mxu1 }
 0x178   :  { %v769_v49 = vpack.c.bf16 %v654_v44, %v653_v41  ;;  %v1229_v0 = vadd.f32 %v2438_v46, %v882_v47 }
 0x179   :  { %v611_v50 = vpop.f32.mrf.mxu2 }
 0x17a   :  { %v612_v54 = vadd.f32 %v2398_v35, %v611_v50  ;;  %921 = vmatmul.bf16.gmra.mxu1 %v769_v49  ;;  %v1421_v8 = vadd.f32 %v1883_v61, %v1229_v0  ;;  %v1952_v61 = vunpack.c.h.bf16 %v2173_v52 }
 0x17b   :  { %v534_v56 = vpop.f32.mrf.mxu0  ;;  %v959_v57 = vpop.f32.mrf.mxu3 }
 0x17c   :  { %v686_v59 = vmax.f32 %v612_v54, 0.0  ;;  %v1260_v60 = vadd.f32 %v2438_v46, %v959_v57  ;;  %v535_v4 = vadd.f32 %v2398_v35, %v534_v56 }
 0x17e   :  { %v785_v1 = vpack.c.bf16 %v686_v59, %v685_v58  ;;  %v1452_v2 = vadd.f32 %v1944_v55, %v1260_v60  ;;  %v655_v12 = vmax.f32 %v535_v4, 0.0  ;;  %v1951_v58 = vunpack.c.l.bf16 %v2173_v52  ;;  %v2158_v59 = vld [vmem:[#allocation3 + $0x30] sm:$0xff]  }
 0x17f   :  { %v884_v3 = vpop.f32.mrf.mxu1  ;;  %v1892_v4 = vunpack.c.h.bf16 %v2158_v59 }
 0x180   :  { %v2091_v5 = vpack.c.bf16 %v1452_v2, %v1451_v63  ;;  %v1230_v6 = vadd.f32 %v2438_v46, %v884_v3  ;;  %1001 = vmatmul.bf16.gmra.mxu3 %v785_v1  ;;  %v1891_v3 = vunpack.c.l.bf16 %v2158_v59 }
 0x181   :  { %v614_v7 = vpop.f32.mrf.mxu2 }
 0x182   :  { %2202 = vst [vmem:[#allocation9 + $0x98] sm:$0xff] %v2091_v5   ;;  %v1422_v9 = vadd.f32 %v1884_v62, %v1230_v6  ;;  %v615_v18 = vadd.f32 %v2398_v35, %v614_v7 }
 0x183   :  { %v536_v10 = vpop.f32.mrf.mxu0  ;;  %v962_v11 = vpop.f32.mrf.mxu3 }
 0x184   :  { %v2016_v13 = vpack.c.bf16 %v1422_v9, %v1421_v8  ;;  %v537_v14 = vadd.f32 %v2398_v35, %v536_v10  ;;  %v1261_v21 = vadd.f32 %v2438_v46, %v962_v11  ;;  %v687_v28 = vmax.f32 %v615_v18, 0.0 }
 0x186   :  { %2187 = vst [vmem:[#allocation9 + $0x20] sm:$0xff] %v2016_v13   ;;  %v656_v15 = vmax.f32 %v537_v14, 0.0  ;;  %v1453_v33 = vadd.f32 %v1947_v22, %v1261_v21  ;;  %v2174_v22 = vld [vmem:[#allocation3 + $0xb0] sm:$0xff]  }
 0x187   :  { %v887_v17 = vpop.f32.mrf.mxu1 }
 0x188   :  { %v770_v19 = vpack.c.bf16 %v656_v15, %v655_v12  ;;  %v1231_v34 = vadd.f32 %v2438_v46, %v887_v17 }
 0x189   :  { %v616_v20 = vpop.f32.mrf.mxu2 }
 0x18a   :  { %v617_v24 = vadd.f32 %v2398_v35, %v616_v20  ;;  %926 = vmatmul.bf16.gmra.mxu1 %v770_v19  ;;  %v1423_v43 = vadd.f32 %v1887_v31, %v1231_v34  ;;  %v1956_v31 = vunpack.c.h.bf16 %v2174_v22 }
 0x18b   :  { %v539_v26 = vpop.f32.mrf.mxu0  ;;  %v964_v27 = vpop.f32.mrf.mxu3 }
 0x18c   :  { %v688_v29 = vmax.f32 %v617_v24, 0.0  ;;  %v1262_v30 = vadd.f32 %v2438_v46, %v964_v27  ;;  %v540_v39 = vadd.f32 %v2398_v35, %v539_v26 }
 0x18e   :  { %v786_v36 = vpack.c.bf16 %v688_v29, %v687_v28  ;;  %v1454_v37 = vadd.f32 %v1948_v25, %v1262_v30  ;;  %v657_v48 = vmax.f32 %v540_v39, 0.0  ;;  %v1955_v28 = vunpack.c.l.bf16 %v2174_v22  ;;  %v2159_v29 = vld [vmem:[#allocation3 + $0x38] sm:$0xff]  }
 0x18f   :  { %v889_v38 = vpop.f32.mrf.mxu1 }
 0x190   :  { %v2096_v40 = vpack.c.bf16 %v1454_v37, %v1453_v33  ;;  %v1232_v41 = vadd.f32 %v2438_v46, %v889_v38  ;;  %1006 = vmatmul.bf16.gmra.mxu3 %v786_v36  ;;  %v1895_v37 = vunpack.c.l.bf16 %v2159_v29  ;;  %v1896_v38 = vunpack.c.h.bf16 %v2159_v29 }
 0x191   :  { %v619_v42 = vpop.f32.mrf.mxu2 }
 0x192   :  { %2203 = vst [vmem:[#allocation9 + $0xa0] sm:$0xff] %v2096_v40   ;;  %v1424_v44 = vadd.f32 %v1888_v32, %v1232_v41  ;;  %v620_v54 = vadd.f32 %v2398_v35, %v619_v42 }
 0x193   :  { %v541_v45 = vpop.f32.mrf.mxu0  ;;  %v967_v47 = vpop.f32.mrf.mxu3 }
 0x194   :  { %v2021_v49 = vpack.c.bf16 %v1424_v44, %v1423_v43  ;;  %v542_v50 = vadd.f32 %v2398_v35, %v541_v45  ;;  %v1263_v57 = vadd.f32 %v2438_v46, %v967_v47  ;;  %v689_v0 = vmax.f32 %v620_v54, 0.0  ;;  %v2160_v54 = vld [vmem:[#allocation3 + $0x40] sm:$0xff]  }
 0x196   :  { %2188 = vst [vmem:[#allocation9 + $0x28] sm:$0xff] %v2021_v49   ;;  %v658_v51 = vmax.f32 %v542_v50, 0.0  ;;  %v1455_v5 = vadd.f32 %v1951_v58, %v1263_v57  ;;  %v2175_v50 = vld [vmem:[#allocation3 + $0xb8] sm:$0xff]   ;;  %v1899_v58 = vunpack.c.l.bf16 %v2160_v54 }
 0x197   :  { %v892_v53 = vpop.f32.mrf.mxu1 }
 0x198   :  { %v771_v55 = vpack.c.bf16 %v658_v51, %v657_v48  ;;  %v1233_v6 = vadd.f32 %v2438_v46, %v892_v53  ;;  %v1959_v53 = vunpack.c.l.bf16 %v2175_v50 }
 0x199   :  { %v621_v56 = vpop.f32.mrf.mxu2 }
 0x19a   :  { %v622_v60 = vadd.f32 %v2398_v35, %v621_v56  ;;  %931 = vmatmul.bf16.gmra.mxu1 %v771_v55  ;;  %v1425_v14 = vadd.f32 %v1891_v3, %v1233_v6  ;;  %v1960_v55 = vunpack.c.h.bf16 %v2175_v50  ;;  %v2176_v6 = vld [vmem:[#allocation3 + $0xc0] sm:$0xff]  }
 0x19b   :  { %v544_v62 = vpop.f32.mrf.mxu0  ;;  %v969_v63 = vpop.f32.mrf.mxu3 }
 0x19c   :  { %v690_v1 = vmax.f32 %v622_v60, 0.0  ;;  %v1264_v2 = vadd.f32 %v2438_v46, %v969_v63  ;;  %v545_v10 = vadd.f32 %v2398_v35, %v544_v62  ;;  %v1900_v62 = vunpack.c.h.bf16 %v2160_v54 }
 0x19e   :  { %v787_v7 = vpack.c.bf16 %v690_v1, %v689_v0  ;;  %v1456_v8 = vadd.f32 %v1952_v61, %v1264_v2  ;;  %v659_v18 = vmax.f32 %v545_v10, 0.0  ;;  %v2161_v10 = vld [vmem:[#allocation3 + $0x48] sm:$0xff]  }
 0x19f   :  { %v894_v9 = vpop.f32.mrf.mxu1 }
 0x1a0   :  { %v2101_v11 = vpack.c.bf16 %v1456_v8, %v1455_v5  ;;  %v1234_v12 = vadd.f32 %v2438_v46, %v894_v9  ;;  %1011 = vmatmul.bf16.gmra.mxu3 %v787_v7  ;;  %v1963_v9 = vunpack.c.l.bf16 %v2176_v6 }
 0x1a1   :  { %v624_v13 = vpop.f32.mrf.mxu2 }
 0x1a2   :  { %2204 = vst [vmem:[#allocation9 + $0xa8] sm:$0xff] %v2101_v11   ;;  %v1426_v15 = vadd.f32 %v1892_v4, %v1234_v12  ;;  %v625_v24 = vadd.f32 %v2398_v35, %v624_v13  ;;  %v1964_v11 = vunpack.c.h.bf16 %v2176_v6 }
 0x1a3   :  { %v546_v16 = vpop.f32.mrf.mxu0  ;;  %v972_v17 = vpop.f32.mrf.mxu3 }
 0x1a4   :  { %v2026_v19 = vpack.c.bf16 %v1426_v15, %v1425_v14  ;;  %v547_v20 = vadd.f32 %v2398_v35, %v546_v16  ;;  %v1265_v27 = vadd.f32 %v2438_v46, %v972_v17  ;;  %v691_v33 = vmax.f32 %v625_v24, 0.0 }
 0x1a5   :  { %v1903_v14 = vunpack.c.l.bf16 %v2161_v10 }
 0x1a6   :  { %2189 = vst [vmem:[#allocation9 + $0x30] sm:$0xff] %v2026_v19   ;;  %v660_v21 = vmax.f32 %v547_v20, 0.0  ;;  %v1457_v39 = vadd.f32 %v1955_v28, %v1265_v27 }
 0x1a7   :  { %v897_v23 = vpop.f32.mrf.mxu1 }
 0x1a8   :  { %v772_v25 = vpack.c.bf16 %v660_v21, %v659_v18  ;;  %v1235_v40 = vadd.f32 %v2438_v46, %v897_v23  ;;  %v1904_v18 = vunpack.c.h.bf16 %v2161_v10 }
 0x1a9   :  { %v626_v26 = vpop.f32.mrf.mxu2 }
 0x1aa   :  { %v627_v30 = vadd.f32 %v2398_v35, %v626_v26  ;;  %936 = vmatmul.bf16.gmra.mxu1 %v772_v25  ;;  %v1427_v35 = vadd.f32 %v1895_v37, %v1235_v40  ;;  %v2177_v26 = vld [vmem:[#allocation3 + $0xc8] sm:$0xff]  }
 0x1ab   :  { %v974_v32 = vpop.f32.mrf.mxu3  ;;  %v1967_v29 = vunpack.c.l.bf16 %v2177_v26 }
 0x1ac   :  { %v692_v34 = vmax.f32 %v627_v30, 0.0  ;;  %v1266_v36 = vadd.f32 %v2438_v46, %v974_v32  ;;  %v2162_v30 = vld [vmem:[#allocation3 + $0x50] sm:$0xff]  }
 0x1ae   :  { %v788_v41 = vpack.c.bf16 %v692_v34, %v691_v33  ;;  %v1458_v42 = vadd.f32 %v1956_v31, %v1266_v36  ;;  %v1968_v31 = vunpack.c.h.bf16 %v2177_v26  ;;  %v1907_v34 = vunpack.c.l.bf16 %v2162_v30 }
 0x1af   :  { %v899_v43 = vpop.f32.mrf.mxu1 }
 0x1b0   :  { %v2106_v44 = vpack.c.bf16 %v1458_v42, %v1457_v39  ;;  %v1236_v45 = vadd.f32 %v2438_v46, %v899_v43  ;;  %1016 = vmatmul.bf16.gmra.mxu3 %v788_v41  ;;  %v1908_v39 = vunpack.c.h.bf16 %v2162_v30 }
 0x1b2   :  { %2205 = vst [vmem:[#allocation9 + $0xb0] sm:$0xff] %v2106_v44   ;;  %v1428_v47 = vadd.f32 %v1896_v38, %v1236_v45 }
 0x1b3   :  { %v977_v48 = vpop.f32.mrf.mxu3 }
 0x1b4   :  { %v2031_v49 = vpack.c.bf16 %v1428_v47, %v1427_v35  ;;  %v1267_v52 = vadd.f32 %v2438_v46, %v977_v48  ;;  %v2178_v47 = vld [vmem:[#allocation3 + $0xd0] sm:$0xff]  }
 0x1b5   :  { %v1971_v50 = vunpack.c.l.bf16 %v2178_v47 }
 0x1b6   :  { %2190 = vst [vmem:[#allocation9 + $0x38] sm:$0xff] %v2031_v49   ;;  %v1459_v59 = vadd.f32 %v1959_v53, %v1267_v52  ;;  %v1972_v52 = vunpack.c.h.bf16 %v2178_v47 }
 0x1b7   :  { %v902_v51 = vpop.f32.mrf.mxu1 }
 0x1b8   :  { %v1237_v60 = vadd.f32 %v2438_v46, %v902_v51  ;;  %v2163_v51 = vld [vmem:[#allocation3 + $0x58] sm:$0xff]  }
 0x1ba   :  { %v1429_v2 = vadd.f32 %v1899_v58, %v1237_v60 }
 0x1bb   :  { %v979_v56 = vpop.f32.mrf.mxu3 }
 0x1bc   :  { %v1268_v57 = vadd.f32 %v2438_v46, %v979_v56 }
 0x1be   :  { %v1460_v61 = vadd.f32 %v1960_v55, %v1268_v57  ;;  %v1911_v55 = vunpack.c.l.bf16 %v2163_v51 }
 0x1bf   :  { %v904_v63 = vpop.f32.mrf.mxu1 }
 0x1c0   :  { %v2111_v0 = vpack.c.bf16 %v1460_v61, %v1459_v59  ;;  %v1238_v1 = vadd.f32 %v2438_v46, %v904_v63  ;;  %v1912_v59 = vunpack.c.h.bf16 %v2163_v51 }
 0x1c2   :  { %2206 = vst [vmem:[#allocation9 + $0xb8] sm:$0xff] %v2111_v0   ;;  %v1430_v3 = vadd.f32 %v1900_v62, %v1238_v1 }
 0x1c3   :  { %v982_v4 = vpop.f32.mrf.mxu3 }
 0x1c4   :  { %v2036_v5 = vpack.c.bf16 %v1430_v3, %v1429_v2  ;;  %v1269_v8 = vadd.f32 %v2438_v46, %v982_v4  ;;  %v2179_v3 = vld [vmem:[#allocation3 + $0xd8] sm:$0xff]  }
 0x1c5   :  { %v1975_v6 = vunpack.c.l.bf16 %v2179_v3 }
 0x1c6   :  { %2191 = vst [vmem:[#allocation9 + $0x40] sm:$0xff] %v2036_v5   ;;  %v1461_v15 = vadd.f32 %v1963_v9, %v1269_v8  ;;  %v1976_v8 = vunpack.c.h.bf16 %v2179_v3 }
 0x1c7   :  { %v907_v7 = vpop.f32.mrf.mxu1 }
 0x1c8   :  { %v1239_v16 = vadd.f32 %v2438_v46, %v907_v7  ;;  %v2164_v7 = vld [vmem:[#allocation3 + $0x60] sm:$0xff]  }
 0x1ca   :  { %v1431_v22 = vadd.f32 %v1903_v14, %v1239_v16 }
 0x1cb   :  { %v984_v12 = vpop.f32.mrf.mxu3 }
 0x1cc   :  { %v1270_v13 = vadd.f32 %v2438_v46, %v984_v12 }
 0x1ce   :  { %v1462_v17 = vadd.f32 %v1964_v11, %v1270_v13  ;;  %v1915_v11 = vunpack.c.l.bf16 %v2164_v7 }
 0x1cf   :  { %v909_v19 = vpop.f32.mrf.mxu1 }
 0x1d0   :  { %v2116_v20 = vpack.c.bf16 %v1462_v17, %v1461_v15  ;;  %v1240_v21 = vadd.f32 %v2438_v46, %v909_v19  ;;  %v1916_v15 = vunpack.c.h.bf16 %v2164_v7 }
 0x1d2   :  { %2207 = vst [vmem:[#allocation9 + $0xc0] sm:$0xff] %v2116_v20   ;;  %v1432_v23 = vadd.f32 %v1904_v18, %v1240_v21 }
 0x1d3   :  { %v987_v24 = vpop.f32.mrf.mxu3 }
 0x1d4   :  { %v2041_v25 = vpack.c.bf16 %v1432_v23, %v1431_v22  ;;  %v1271_v28 = vadd.f32 %v2438_v46, %v987_v24  ;;  %v2180_v23 = vld [vmem:[#allocation3 + $0xe0] sm:$0xff]  }
 0x1d5   :  { %v1979_v26 = vunpack.c.l.bf16 %v2180_v23 }
 0x1d6   :  { %2192 = vst [vmem:[#allocation9 + $0x48] sm:$0xff] %v2041_v25   ;;  %v1463_v36 = vadd.f32 %v1967_v29, %v1271_v28  ;;  %v1980_v28 = vunpack.c.h.bf16 %v2180_v23 }
 0x1d7   :  { %v912_v27 = vpop.f32.mrf.mxu1 }
 0x1d8   :  { %v1241_v37 = vadd.f32 %v2438_v46, %v912_v27  ;;  %v2165_v27 = vld [vmem:[#allocation3 + $0x68] sm:$0xff]  }
 0x1da   :  { %v1433_v43 = vadd.f32 %v1907_v34, %v1241_v37 }
 0x1db   :  { %v989_v32 = vpop.f32.mrf.mxu3 }
 0x1dc   :  { %v1272_v33 = vadd.f32 %v2438_v46, %v989_v32 }
 0x1de   :  { %v1464_v38 = vadd.f32 %v1968_v31, %v1272_v33  ;;  %v1919_v31 = vunpack.c.l.bf16 %v2165_v27 }
 0x1df   :  { %v914_v40 = vpop.f32.mrf.mxu1 }
 0x1e0   :  { %v2121_v41 = vpack.c.bf16 %v1464_v38, %v1463_v36  ;;  %v1242_v42 = vadd.f32 %v2438_v46, %v914_v40  ;;  %v1920_v36 = vunpack.c.h.bf16 %v2165_v27 }
 0x1e2   :  { %2208 = vst [vmem:[#allocation9 + $0xc8] sm:$0xff] %v2121_v41   ;;  %v1434_v44 = vadd.f32 %v1908_v39, %v1242_v42 }
 0x1e3   :  { %v992_v45 = vpop.f32.mrf.mxu3 }
 0x1e4   :  { %v2046_v35 = vpack.c.bf16 %v1434_v44, %v1433_v43  ;;  %v1273_v49 = vadd.f32 %v2438_v46, %v992_v45  ;;  %v2181_v44 = vld [vmem:[#allocation3 + $0xe8] sm:$0xff]  }
 0x1e5   :  { %v1983_v47 = vunpack.c.l.bf16 %v2181_v44 }
 0x1e6   :  { %2193 = vst [vmem:[#allocation9 + $0x50] sm:$0xff] %v2046_v35   ;;  %v1465_v56 = vadd.f32 %v1971_v50, %v1273_v49  ;;  %v1984_v49 = vunpack.c.h.bf16 %v2181_v44 }
 0x1e7   :  { %v917_v48 = vpop.f32.mrf.mxu1 }
 0x1e8   :  { %v1243_v57 = vadd.f32 %v2438_v46, %v917_v48  ;;  %v2166_v48 = vld [vmem:[#allocation3 + $0x70] sm:$0xff]  }
 0x1ea   :  { %v1435_v63 = vadd.f32 %v1911_v55, %v1243_v57 }
 0x1eb   :  { %v994_v53 = vpop.f32.mrf.mxu3 }
 0x1ec   :  { %v1274_v54 = vadd.f32 %v2438_v46, %v994_v53 }
 0x1ee   :  { %v1466_v58 = vadd.f32 %v1972_v52, %v1274_v54  ;;  %v1923_v52 = vunpack.c.l.bf16 %v2166_v48 }
 0x1ef   :  { %v919_v60 = vpop.f32.mrf.mxu1 }
 0x1f0   :  { %v2126_v61 = vpack.c.bf16 %v1466_v58, %v1465_v56  ;;  %v1244_v62 = vadd.f32 %v2438_v46, %v919_v60  ;;  %v1924_v56 = vunpack.c.h.bf16 %v2166_v48 }
 0x1f2   :  { %2209 = vst [vmem:[#allocation9 + $0xd0] sm:$0xff] %v2126_v61   ;;  %v1436_v0 = vadd.f32 %v1912_v59, %v1244_v62 }
 0x1f3   :  { %v997_v1 = vpop.f32.mrf.mxu3 }
 0x1f4   :  { %v2051_v2 = vpack.c.bf16 %v1436_v0, %v1435_v63  ;;  %v1275_v5 = vadd.f32 %v2438_v46, %v997_v1  ;;  %v2182_v0 = vld [vmem:[#allocation3 + $0xf0] sm:$0xff]  }
 0x1f5   :  { %v1987_v3 = vunpack.c.l.bf16 %v2182_v0 }
 0x1f6   :  { %2194 = vst [vmem:[#allocation9 + $0x58] sm:$0xff] %v2051_v2   ;;  %v1467_v12 = vadd.f32 %v1975_v6, %v1275_v5  ;;  %v1988_v5 = vunpack.c.h.bf16 %v2182_v0 }
 0x1f7   :  { %v922_v4 = vpop.f32.mrf.mxu1 }
 0x1f8   :  { %v1245_v13 = vadd.f32 %v2438_v46, %v922_v4  ;;  %v2167_v4 = vld [vmem:[#allocation3 + $0x78] sm:$0xff]  }
 0x1fa   :  { %v1437_v19 = vadd.f32 %v1915_v11, %v1245_v13 }
 0x1fb   :  { %v999_v9 = vpop.f32.mrf.mxu3 }
 0x1fc   :  { %v1276_v10 = vadd.f32 %v2438_v46, %v999_v9 }
 0x1fe   :  { %v1468_v14 = vadd.f32 %v1976_v8, %v1276_v10  ;;  %v1927_v8 = vunpack.c.l.bf16 %v2167_v4 }
 0x1ff   :  { %v924_v16 = vpop.f32.mrf.mxu1 }
 0x200   :  { %v2131_v17 = vpack.c.bf16 %v1468_v14, %v1467_v12  ;;  %v1246_v18 = vadd.f32 %v2438_v46, %v924_v16  ;;  %v1928_v12 = vunpack.c.h.bf16 %v2167_v4 }
 0x202   :  { %2210 = vst [vmem:[#allocation9 + $0xd8] sm:$0xff] %v2131_v17   ;;  %v1438_v20 = vadd.f32 %v1916_v15, %v1246_v18 }
 0x203   :  { %v1002_v21 = vpop.f32.mrf.mxu3 }
 0x204   :  { %v2056_v22 = vpack.c.bf16 %v1438_v20, %v1437_v19  ;;  %v1277_v25 = vadd.f32 %v2438_v46, %v1002_v21  ;;  %v2183_v20 = vld [vmem:[#allocation3 + $0xf8] sm:$0xff]  }
 0x205   :  { %v1992_v23 = vunpack.c.h.bf16 %v2183_v20 }
 0x206   :  { %2195 = vst [vmem:[#allocation9 + $0x60] sm:$0xff] %v2056_v22   ;;  %v1469_v32 = vadd.f32 %v1979_v26, %v1277_v25  ;;  %v1991_v22 = vunpack.c.l.bf16 %v2183_v20 }
 0x207   :  { %v927_v24 = vpop.f32.mrf.mxu1 }
 0x208   :  { %v1247_v33 = vadd.f32 %v2438_v46, %v927_v24 }
 0x20a   :  { %v1439_v40 = vadd.f32 %v1919_v31, %v1247_v33 }
 0x20b   :  { %v1004_v29 = vpop.f32.mrf.mxu3 }
 0x20c   :  { %v1278_v30 = vadd.f32 %v2438_v46, %v1004_v29 }
 0x20e   :  { %v1470_v34 = vadd.f32 %v1980_v28, %v1278_v30 }
 0x20f   :  { %v929_v37 = vpop.f32.mrf.mxu1 }
 0x210   :  { %v2136_v38 = vpack.c.bf16 %v1470_v34, %v1469_v32  ;;  %v1248_v39 = vadd.f32 %v2438_v46, %v929_v37 }
 0x212   :  { %2211 = vst [vmem:[#allocation9 + $0xe0] sm:$0xff] %v2136_v38   ;;  %v1440_v41 = vadd.f32 %v1920_v36, %v1248_v39 }
 0x213   :  { %v1007_v42 = vpop.f32.mrf.mxu3 }
 0x214   :  { %v2061_v43 = vpack.c.bf16 %v1440_v41, %v1439_v40  ;;  %v1279_v35 = vadd.f32 %v2438_v46, %v1007_v42 }
 0x216   :  { %2196 = vst [vmem:[#allocation9 + $0x68] sm:$0xff] %v2061_v43   ;;  %v1471_v53 = vadd.f32 %v1983_v47, %v1279_v35 }
 0x217   :  { %v932_v45 = vpop.f32.mrf.mxu1 }
 0x218   :  { %v1249_v54 = vadd.f32 %v2438_v46, %v932_v45 }
 0x21a   :  { %v1441_v60 = vadd.f32 %v1923_v52, %v1249_v54 }
 0x21b   :  { %v1009_v50 = vpop.f32.mrf.mxu3 }
 0x21c   :  { %v1280_v51 = vadd.f32 %v2438_v46, %v1009_v50 }
 0x21e   :  { %v1472_v55 = vadd.f32 %v1984_v49, %v1280_v51 }
 0x21f   :  { %v934_v57 = vpop.f32.mrf.mxu1 }
 0x220   :  { %v2141_v58 = vpack.c.bf16 %v1472_v55, %v1471_v53  ;;  %v1250_v59 = vadd.f32 %v2438_v46, %v934_v57 }
 0x222   :  { %2212 = vst [vmem:[#allocation9 + $0xe8] sm:$0xff] %v2141_v58   ;;  %v1442_v61 = vadd.f32 %v1924_v56, %v1250_v59 }
 0x223   :  { %v1012_v62 = vpop.f32.mrf.mxu3 }
 0x224   :  { %v2066_v63 = vpack.c.bf16 %v1442_v61, %v1441_v60  ;;  %v1281_v2 = vadd.f32 %v2438_v46, %v1012_v62 }
 0x226   :  { %2197 = vst [vmem:[#allocation9 + $0x70] sm:$0xff] %v2066_v63   ;;  %v1473_v9 = vadd.f32 %v1987_v3, %v1281_v2 }
 0x227   :  { %v937_v1 = vpop.f32.mrf.mxu1 }
 0x228   :  { %v1251_v10 = vadd.f32 %v2438_v46, %v937_v1 }
 0x22a   :  { %v1443_v16 = vadd.f32 %v1927_v8, %v1251_v10 }
 0x22b   :  { %v1014_v6 = vpop.f32.mrf.mxu3 }
 0x22c   :  { %v1282_v7 = vadd.f32 %v2438_v46, %v1014_v6 }
 0x22e   :  { %v1474_v11 = vadd.f32 %v1988_v5, %v1282_v7 }
 0x22f   :  { %v939_v13 = vpop.f32.mrf.mxu1 }
 0x230   :  { %v2146_v14 = vpack.c.bf16 %v1474_v11, %v1473_v9  ;;  %v1252_v15 = vadd.f32 %v2438_v46, %v939_v13 }
 0x232   :  { %2213 = vst [vmem:[#allocation9 + $0xf0] sm:$0xff] %v2146_v14   ;;  %v1444_v17 = vadd.f32 %v1928_v12, %v1252_v15 }
 0x233   :  { %v1017_v18 = vpop.f32.mrf.mxu3 }
 0x234   :  { %v2071_v19 = vpack.c.bf16 %v1444_v17, %v1443_v16  ;;  %v1283_v21 = vadd.f32 %v2438_v46, %v1017_v18 }
 0x236   :  { %2198 = vst [vmem:[#allocation9 + $0x78] sm:$0xff] %v2071_v19   ;;  %v1475_v26 = vadd.f32 %v1991_v22, %v1283_v21 }
 0x23b   :  { %v1019_v24 = vpop.f32.mrf.mxu3 }
 0x23c   :  { %v1284_v25 = vadd.f32 %v2438_v46, %v1019_v24 }
 0x23e   :  { %v1476_v27 = vadd.f32 %v1992_v23, %v1284_v25 }
 0x240   :  { %v2151_v28 = vpack.c.bf16 %v1476_v27, %v1475_v26 }
 0x242   :  { %2214 = vst [vmem:[#allocation9 + $0xf8] sm:$0xff] %v2151_v28  }
 0x243   :  { %1617 = dma.vmem_to_hbm [thread:$0]  %s1610_s10, 4096, %s1612_s13, [#allocation5], %s2342_s26, %s2342_s26, %s2343_s27  }
 0x244   :  { %2339 = dma.done.wait [#allocation5], 4096  }
 0x245   :  { %2340 = vsyncadd [#allocation5], 4294963200 }
 0x246   :  { %1622 = vsyncpa [#allocation4], 1 }
 0x247   :  { %1623 = vsyncpa [#allocation7], 1 }
 0x248   :  { %1624 = vsyncpa [#allocation5], 1 }

</bundles_post_ra>
